<compile_context>
chip_gen: v6e
topology: v6e:2x2x1
jax: 0.10.0
libtpu: 0.0.40
codegen_flags: <defaults>
</compile_context>

<pallas_src>
import math

import jax
import jax.numpy as jnp
from jax.experimental import pallas as pl
from jax.experimental.pallas import tpu as pltpu

# ---------------- model dimensions (small, synthetic) ----------------
VOCAB = 64
B = 2              # batch
S = 8              # sequence length
BS = B * S
H = 32             # BERT hidden size (stand-in)
N_HEADS = 2
D_HEAD = H // N_HEADS
FFN = 64           # BERT intermediate size
C_EMB = 8          # config.c_em -> coord_linear = nn.Linear(1, 2*C_EMB)
N_EMB = 32         # hidden width of the classification head (linear1 out)
N_CLASSES = 2      # linear2 out
LN_EPS = 1e-12
PAD_W = 128        # lane width all slabs are padded to

# ------- packed weight-matrix slab (bf16), row offsets -------
# Q/K/V stored per head as separate (H, D_HEAD) row blocks, head-major:
#   [q0 | k0 | v0 | q1 | k1 | v1]  -> per-head matmul outputs, zero lane slicing
M_WQKV = 0
M_WO = M_WQKV + 3 * N_HEADS * H     # (H, H), rows head-major -> free row slices
M_WF1 = M_WO + H                    # (H, FFN)
M_WF2 = M_WF1 + H                   # (FFN, H)
M_W1P = M_WF2 + FFN                 # (H, N_EMB)        linear1 rows for pooled
M_W1C = M_W1P + H                   # (2*C_EMB, N_EMB)  linear1 rows for coord_emb
M_W2 = M_W1C + 2 * C_EMB            # (N_EMB, N_CLASSES)
M_ROWS = M_W2 + N_EMB               # = 400 (multiple of 16 -> clean bf16 tiles)

# ------- packed bias / LN / coord vector slab (f32), one row each -------
V_LNE_G, V_LNE_B = 0, 1             # embedding LayerNorm
V_BQKV = 2                          # 6 rows: per-head [bq, bk, bv] x heads
V_BO = V_BQKV + 3 * N_HEADS         # 8
V_LN1_G, V_LN1_B = 9, 10
V_BF1, V_BF2 = 11, 12
V_LN2_G, V_LN2_B = 13, 14
V_WC, V_BC = 15, 16                 # coord_linear: Linear(1, 2*C_EMB)
V_B1, V_B2 = 17, 18
V_ROWS = 19

# ------- packed per-call activation slab (f32), row offsets -------
A_H = 0                             # rows 0..BS-1 : hidden states (BS, H)
A_MASK = BS                         # B rows       : additive mask (B, S)
A_COORD = BS + B                    # B rows       : coord broadcast (B, 2*C_EMB)
A_ROWS = 24                         # padded to a multiple of 8 sublanes

BF16 = jnp.bfloat16


def _gelu(x):
    # TODO(synk): torch nn.GELU() is the exact erf GELU; the tanh
    # approximation is used here for guaranteed Mosaic lowering (<=1e-3 diff).
    return jax.nn.gelu(x, approximate=True)


def _layernorm(x, g, b):
    mu = jnp.mean(x, axis=-1, keepdims=True)
    var = jnp.mean(jnp.square(x - mu), axis=-1, keepdims=True)
    return (x - mu) * jax.lax.rsqrt(var + LN_EPS) * g + b


# ----------------------- fused forward kernel -------------------------
def _geoerx_kernel(acts_ref, mats_ref, vecs_ref, out_ref):
    # static slab accessors (zero-cost ref views -> VMEM loads of exact size)
    def mat(r0, rows, cols):
        return mats_ref[r0:r0 + rows, 0:cols]          # bf16 weights

    def vec(r, cols):
        return vecs_ref[r:r + 1, 0:cols]               # f32 vectors

    def mm(a, r0, rows, cols):
        # bf16 x bf16 matmul with f32 accumulate (MXU native path on all gens)
        return jnp.dot(a.astype(BF16), mat(r0, rows, cols),
                       preferred_element_type=jnp.float32)

    scale = 1.0 / math.sqrt(D_HEAD)

    x = acts_ref[A_H:A_H + BS, 0:H]                          # (BS, H) f32
    mask_add = acts_ref[A_MASK:A_MASK + B, 0:S][:, None, :]  # (B, 1, S) additive
    coord_b = acts_ref[A_COORD:A_COORD + B, 0:2 * C_EMB]     # (B, 2C) coord bcast

    # ---- encoder (1-layer BERT stand-in), row-batched over B*S ----
    hb = _layernorm(x, vec(V_LNE_G, H), vec(V_LNE_B, H))     # (BS, H) f32
    hb16 = hb.astype(BF16)                                    # cast once, reuse

    # per-head attention: per-head weight row blocks -> no lane slicing, no concat
    attn = None
    for hd in range(N_HEADS):                                 # N_HEADS=2, static
        rq = M_WQKV + (hd * 3 + 0) * H
        rk = M_WQKV + (hd * 3 + 1) * H
        rv = M_WQKV + (hd * 3 + 2) * H
        bq = V_BQKV + hd * 3
        qh = (mm(hb16, rq, H, D_HEAD) + vec(bq + 0, D_HEAD)).reshape(B, S, D_HEAD)
        kh = (mm(hb16, rk, H, D_HEAD) + vec(bq + 1, D_HEAD)).reshape(B, S, D_HEAD)
        vh = (mm(hb16, rv, H, D_HEAD) + vec(bq + 2, D_HEAD)).reshape(B, S, D_HEAD)

        sc = jnp.einsum('bqd,bkd->bqk', qh.astype(BF16), kh.astype(BF16),
                        preferred_element_type=jnp.float32) * scale
        sc = sc + mask_add
        # keep the row-max subtraction: guards fully-masked query rows
        sc = sc - jnp.max(sc, axis=-1, keepdims=True)
        p = jnp.exp(sc)
        p = p * pl.reciprocal(jnp.sum(p, axis=-1, keepdims=True), approx=True)
        ctx = jnp.einsum('bqk,bkd->bqd', p.astype(BF16), vh.astype(BF16),
                         preferred_element_type=jnp.float32)  # (B, S, DH)

        # output projection, per-head row block of Wo (free ref row slice)
        part = mm(ctx.reshape(BS, D_HEAD), M_WO + hd * D_HEAD, D_HEAD, H)
        attn = part if attn is None else attn + part
    attn = attn + vec(V_BO, H)                                # (BS, H)

    h1 = _layernorm(hb + attn, vec(V_LN1_G, H), vec(V_LN1_B, H))
    ffn = _gelu(mm(h1, M_WF1, H, FFN) + vec(V_BF1, FFN))
    ffn = mm(ffn, M_WF2, FFN, H) + vec(V_BF2, H)
    h2 = _layernorm(h1 + ffn, vec(V_LN2_G, H), vec(V_LN2_B, H))   # (BS, H)

    # pooled_output = last_hidden_state[:, 0, :]  (CLS row of each batch)
    pooled = h2.reshape(B, S, H)[:, 0:1, :].reshape(B, H)          # strided view

    # ---- classification head (fused, no HBM round trip) ----
    # coord_linear: Linear(1, 2*c_emb) == coord * W + b (inner dim is 1);
    # coord already broadcast across 2*C_EMB lanes in the wrapper.
    coord_emb = coord_b * vec(V_WC, 2 * C_EMB) + vec(V_BC, 2 * C_EMB)   # (B, 2C)

    # cat([pooled, coord_emb], 1) @ W1 == pooled @ W1p + coord_emb @ W1c
    z = mm(pooled, M_W1P, H, N_EMB) + mm(coord_emb, M_W1C, 2 * C_EMB, N_EMB)
    z = _gelu(z + vec(V_B1, N_EMB))
    # TODO(synk): nn.Dropout(p=0.1) omitted -> inference semantics (identity).
    logits = mm(z, M_W2, N_EMB, N_CLASSES) + vec(V_B2, N_CLASSES)

    # log_softmax over dim 1 (exact f32, no approx reciprocal here)
    m = jnp.max(logits, axis=1, keepdims=True)
    lse = m + jnp.log(jnp.sum(jnp.exp(logits - m), axis=1, keepdims=True))
    out_ref[...] = logits - lse


# ----------------------------- wrapper --------------------------------
def geoerx_forward(params, x_ids, x_coord, x_n, att_mask):
    del x_n  # GeoERX ("without neighbors") never uses x_n in forward.

    # glue: embedding lookup (gather) + position add stay in plain JAX
    h = params['tok_emb'][x_ids] + params['pos_emb'][None, :, :]    # (B, S, H)
    h = h.reshape(BS, H).astype(jnp.float32)

    # additive attention mask precomputed once here (keep=0, pad=-1e9)
    mask_add = (att_mask.astype(jnp.float32) - 1.0) * 1e9           # (B, S)

    # torch: x_coord -> (1, B) -> transpose(0, 1) -> (B, 1); broadcast across
    # the coord_linear output width so the kernel never transposes a vector.
    coord_b = jnp.broadcast_to(
        x_coord.astype(jnp.float32).reshape(B, 1), (B, 2 * C_EMB))  # (B, 2C)

    # pack the three activation inputs into ONE lane-padded slab -> 3 DMAs total
    pad = lambda a: jnp.pad(a, ((0, 0), (0, PAD_W - a.shape[1])))
    acts = jnp.concatenate(
        [pad(h), pad(mask_add), pad(coord_b),
         jnp.zeros((A_ROWS - (BS + 2 * B), PAD_W), jnp.float32)], axis=0)

    # advisory cost hint: tiny flops / bytes so XLA schedules around it freely
    flops = 2 * (
        N_HEADS * (3 * BS * H * D_HEAD + 2 * B * S * D_HEAD * S + BS * D_HEAD * H)
        + BS * H * FFN + BS * FFN * H
        + B * H * N_EMB + B * 2 * C_EMB * N_EMB + B * N_EMB * N_CLASSES)
    bytes_accessed = (acts.size * 4 + M_ROWS * PAD_W * 2
                      + V_ROWS * PAD_W * 4 + B * N_CLASSES * 4)
    cost = pl.CostEstimate(flops=flops, transcendentals=2_000,
                           bytes_accessed=bytes_accessed)

    vmem = pl.BlockSpec(memory_space=pltpu.MemorySpace.VMEM)
    return pl.pallas_call(
        _geoerx_kernel,
        out_shape=jax.ShapeDtypeStruct((B, N_CLASSES), jnp.float32),
        in_specs=[vmem, vmem, vmem],
        out_specs=vmem,
        cost_estimate=cost,
    )(acts, params['mats'], params['vecs'])


# ------------------------ deterministic init ---------------------------
def _pad_row(v):
    v = jnp.asarray(v, jnp.float32).reshape(1, -1)
    return jnp.pad(v, ((0, 0), (0, PAD_W - v.shape[1])))


def _pad_mat(m):
    m = jnp.asarray(m, jnp.float32)
    return jnp.pad(m, ((0, 0), (0, PAD_W - m.shape[1])))


def init_params(key):
    ks = jax.random.split(key, 12)
    sd = 0.02
    n = lambda k, shape: jax.random.normal(k, shape, jnp.float32) * sd

    wq, wk, wv = n(ks[2], (H, H)), n(ks[3], (H, H)), n(ks[4], (H, H))
    # per-head column blocks of Wq/Wk/Wv stored as separate row blocks
    qkv_blocks = []
    for hd in range(N_HEADS):
        lo = hd * D_HEAD
        qkv_blocks += [_pad_mat(wq[:, lo:lo + D_HEAD]),
                       _pad_mat(wk[:, lo:lo + D_HEAD]),
                       _pad_mat(wv[:, lo:lo + D_HEAD])]

    # weight-matrix slab: packed once outside jit, stored bf16 (MXU-native)
    mats = jnp.concatenate(qkv_blocks + [
        _pad_mat(n(ks[5], (H, H))),                   # M_WO (rows are head-major)
        _pad_mat(n(ks[6], (H, FFN))),                 # M_WF1
        _pad_mat(n(ks[7], (FFN, H))),                 # M_WF2
        _pad_mat(n(ks[9], (H, N_EMB))),               # M_W1P
        _pad_mat(n(ks[10], (2 * C_EMB, N_EMB))),      # M_W1C
        _pad_mat(n(ks[11], (N_EMB, N_CLASSES))),      # M_W2
    ], axis=0).astype(jnp.bfloat16)
    assert mats.shape == (M_ROWS, PAD_W)

    ones_h = jnp.ones((H,), jnp.float32)
    zeros = lambda w: jnp.zeros((w,), jnp.float32)
    # bias / LN / coord vector slab (f32), one vector per sublane row
    vecs = jnp.concatenate(
        [_pad_row(ones_h), _pad_row(zeros(H))]                        # LNE g, b
        + [_pad_row(zeros(D_HEAD)) for _ in range(3 * N_HEADS)]       # per-head bq,bk,bv
        + [_pad_row(zeros(H)),                                        # V_BO
           _pad_row(ones_h), _pad_row(zeros(H)),                      # LN1 g, b
           _pad_row(zeros(FFN)), _pad_row(zeros(H)),                  # V_BF1, V_BF2
           _pad_row(ones_h), _pad_row(zeros(H)),                      # LN2 g, b
           _pad_row(n(ks[8], (1, 2 * C_EMB))),                        # V_WC
           _pad_row(zeros(2 * C_EMB)),                                # V_BC
           _pad_row(zeros(N_EMB)),                                    # V_B1
           _pad_row(zeros(N_CLASSES))], axis=0)                       # V_B2
    assert vecs.shape == (V_ROWS, PAD_W)

    return dict(
        tok_emb=n(ks[0], (VOCAB, H)),
        pos_emb=n(ks[1], (S, H)),
        mats=mats,
        vecs=vecs,
    )


if __name__ == "__main__":
    key = jax.random.PRNGKey(0)
    pkey, xkey, ckey = jax.random.split(key, 3)

    params = init_params(pkey)
    x_ids = jax.random.randint(xkey, (B, S), 0, VOCAB, dtype=jnp.int32)   # token ids
    x_coord = jax.random.uniform(ckey, (B,), dtype=jnp.float32)           # geo distances
    att_mask = jnp.array([[1] * S, [1] * (S - 2) + [0] * 2], dtype=jnp.int32)
    x_n = None  # neighbors unused by GeoERX

    fwd = jax.jit(geoerx_forward)
    out = fwd(params, x_ids, x_coord, x_n, att_mask)
    jax.block_until_ready(out)

    assert out.shape == (B, N_CLASSES)
    # log_softmax rows must exp-sum to 1
    assert bool(jnp.all(jnp.abs(jnp.sum(jnp.exp(out), axis=1) - 1.0) < 1e-4))
    print("KERNEL_OK")
</pallas_src>

<mosaic_0001>
module attributes {stable_mosaic.version = 11 : i64} {
  func.func @_geoerx_kernel(%arg0: memref<24x128xf32, #tpu.memory_space<vmem>>, %arg1: memref<400x128xbf16, #tpu.memory_space<vmem>>, %arg2: memref<19x128xf32, #tpu.memory_space<vmem>>, %arg3: memref<2x2xf32, #tpu.memory_space<vmem>>) attributes {dimension_semantics = [], scalar_prefetch = 0 : i64, scratch_operands = 0 : i64, tpu.core_type = #tpu.core_type<tc>} {
    %c0 = arith.constant 0 : index
    %c0_0 = arith.constant 0 : index
    %0 = vector.load %arg0[%c0, %c0_0] : memref<24x128xf32, #tpu.memory_space<vmem>>, vector<16x32xf32>
    %c16 = arith.constant 16 : index
    %c0_1 = arith.constant 0 : index
    %1 = vector.load %arg0[%c16, %c0_1] : memref<24x128xf32, #tpu.memory_space<vmem>>, vector<2x8xf32>
    %2 = vector.shape_cast %1 : vector<2x8xf32> to vector<2x1x8xf32>
    %c18 = arith.constant 18 : index
    %c0_2 = arith.constant 0 : index
    %3 = vector.load %arg0[%c18, %c0_2] : memref<24x128xf32, #tpu.memory_space<vmem>>, vector<2x16xf32>
    %c0_3 = arith.constant 0 : index
    %c0_4 = arith.constant 0 : index
    %4 = vector.load %arg2[%c0_3, %c0_4] : memref<19x128xf32, #tpu.memory_space<vmem>>, vector<1x32xf32>
    %c1 = arith.constant 1 : index
    %c0_5 = arith.constant 0 : index
    %5 = vector.load %arg2[%c1, %c0_5] : memref<19x128xf32, #tpu.memory_space<vmem>>, vector<1x32xf32>
    %cst = arith.constant dense<0.000000e+00> : vector<16xf32>
    %6 = vector.multi_reduction <add>, %0, %cst [1] : vector<16x32xf32> to vector<16xf32>
    %7 = vector.shape_cast %6 : vector<16xf32> to vector<16x1xf32>
    %cst_6 = arith.constant 3.200000e+01 : f32
    %8 = vector.broadcast %cst_6 : f32 to vector<16x1xf32>
    %9 = arith.divf %7, %8 : vector<16x1xf32>
    %10 = vector.broadcast %9 : vector<16x1xf32> to vector<16x32xf32>
    %11 = arith.subf %0, %10 : vector<16x32xf32>
    %12 = arith.mulf %11, %11 : vector<16x32xf32>
    %cst_7 = arith.constant dense<0.000000e+00> : vector<16xf32>
    %13 = vector.multi_reduction <add>, %12, %cst_7 [1] : vector<16x32xf32> to vector<16xf32>
    %14 = vector.shape_cast %13 : vector<16xf32> to vector<16x1xf32>
    %cst_8 = arith.constant 3.200000e+01 : f32
    %15 = vector.broadcast %cst_8 : f32 to vector<16x1xf32>
    %16 = arith.divf %14, %15 : vector<16x1xf32>
    %17 = vector.broadcast %9 : vector<16x1xf32> to vector<16x32xf32>
    %18 = arith.subf %0, %17 : vector<16x32xf32>
    %cst_9 = arith.constant 9.99999996E-13 : f32
    %19 = vector.broadcast %cst_9 : f32 to vector<16x1xf32>
    %20 = arith.addf %16, %19 : vector<16x1xf32>
    %21 = math.rsqrt %20 : vector<16x1xf32>
    %22 = vector.broadcast %21 : vector<16x1xf32> to vector<16x32xf32>
    %23 = arith.mulf %18, %22 : vector<16x32xf32>
    %24 = vector.broadcast %4 : vector<1x32xf32> to vector<16x32xf32>
    %25 = arith.mulf %23, %24 : vector<16x32xf32>
    %26 = vector.broadcast %5 : vector<1x32xf32> to vector<16x32xf32>
    %27 = arith.addf %25, %26 : vector<16x32xf32>
    %28 = arith.truncf %27 : vector<16x32xf32> to vector<16x32xbf16>
    %c0_10 = arith.constant 0 : index
    %c0_11 = arith.constant 0 : index
    %29 = vector.load %arg1[%c0_10, %c0_11] : memref<400x128xbf16, #tpu.memory_space<vmem>>, vector<32x16xbf16>
    %cst_12 = arith.constant dense<0.000000e+00> : vector<16x16xf32>
    %30 = tpu.matmul %28, %29, %cst_12 {dimension_numbers = #tpu.dot_dimension_numbers<[1], [0], [0], [1], [0, 0, 1, 1], [], []>} : vector<16x32xbf16>, vector<32x16xbf16>, vector<16x16xf32> -> vector<16x16xf32>
    %c2 = arith.constant 2 : index
    %c0_13 = arith.constant 0 : index
    %31 = vector.load %arg2[%c2, %c0_13] : memref<19x128xf32, #tpu.memory_space<vmem>>, vector<1x16xf32>
    %32 = vector.broadcast %31 : vector<1x16xf32> to vector<16x16xf32>
    %33 = arith.addf %30, %32 : vector<16x16xf32>
    %34 = vector.shape_cast %33 : vector<16x16xf32> to vector<2x8x16xf32>
    %c32 = arith.constant 32 : index
    %c0_14 = arith.constant 0 : index
    %35 = vector.load %arg1[%c32, %c0_14] : memref<400x128xbf16, #tpu.memory_space<vmem>>, vector<32x16xbf16>
    %cst_15 = arith.constant dense<0.000000e+00> : vector<16x16xf32>
    %36 = tpu.matmul %28, %35, %cst_15 {dimension_numbers = #tpu.dot_dimension_numbers<[1], [0], [0], [1], [0, 0, 1, 1], [], []>} : vector<16x32xbf16>, vector<32x16xbf16>, vector<16x16xf32> -> vector<16x16xf32>
    %c3 = arith.constant 3 : index
    %c0_16 = arith.constant 0 : index
    %37 = vector.load %arg2[%c3, %c0_16] : memref<19x128xf32, #tpu.memory_space<vmem>>, vector<1x16xf32>
    %38 = vector.broadcast %37 : vector<1x16xf32> to vector<16x16xf32>
    %39 = arith.addf %36, %38 : vector<16x16xf32>
    %40 = vector.shape_cast %39 : vector<16x16xf32> to vector<2x8x16xf32>
    %c64 = arith.constant 64 : index
    %c0_17 = arith.constant 0 : index
    %41 = vector.load %arg1[%c64, %c0_17] : memref<400x128xbf16, #tpu.memory_space<vmem>>, vector<32x16xbf16>
    %cst_18 = arith.constant dense<0.000000e+00> : vector<16x16xf32>
    %42 = tpu.matmul %28, %41, %cst_18 {dimension_numbers = #tpu.dot_dimension_numbers<[1], [0], [0], [1], [0, 0, 1, 1], [], []>} : vector<16x32xbf16>, vector<32x16xbf16>, vector<16x16xf32> -> vector<16x16xf32>
    %c4 = arith.constant 4 : index
    %c0_19 = arith.constant 0 : index
    %43 = vector.load %arg2[%c4, %c0_19] : memref<19x128xf32, #tpu.memory_space<vmem>>, vector<1x16xf32>
    %44 = vector.broadcast %43 : vector<1x16xf32> to vector<16x16xf32>
    %45 = arith.addf %42, %44 : vector<16x16xf32>
    %46 = vector.shape_cast %45 : vector<16x16xf32> to vector<2x8x16xf32>
    %47 = arith.truncf %34 : vector<2x8x16xf32> to vector<2x8x16xbf16>
    %48 = arith.truncf %40 : vector<2x8x16xf32> to vector<2x8x16xbf16>
    "tpu.trace_start"() <{level = 10 : i32, message = "bqd,bkd->bqk"}> : () -> ()
    %cst_20 = arith.constant dense<0.000000e+00> : vector<2x8x8xf32>
    %49 = tpu.matmul %47, %48, %cst_20 {dimension_numbers = #tpu.dot_dimension_numbers<[2], [2], [1], [1], [0, 0, 0, 1, 1, 1], [0], [0]>} : vector<2x8x16xbf16>, vector<2x8x16xbf16>, vector<2x8x8xf32> -> vector<2x8x8xf32>
    "tpu.trace_stop"() : () -> ()
    %cst_21 = arith.constant 2.500000e-01 : f32
    %50 = vector.broadcast %cst_21 : f32 to vector<2x8x8xf32>
    %51 = arith.mulf %49, %50 : vector<2x8x8xf32>
    %52 = vector.broadcast %2 : vector<2x1x8xf32> to vector<2x8x8xf32>
    %53 = arith.addf %51, %52 : vector<2x8x8xf32>
    %cst_22 = arith.constant dense<0xFF800000> : vector<2x8xf32>
    %54 = vector.multi_reduction <maximumf>, %53, %cst_22 [2] : vector<2x8x8xf32> to vector<2x8xf32>
    %55 = vector.shape_cast %54 : vector<2x8xf32> to vector<2x8x1xf32>
    %56 = vector.broadcast %55 : vector<2x8x1xf32> to vector<2x8x8xf32>
    %57 = arith.subf %53, %56 : vector<2x8x8xf32>
    %58 = math.exp %57 : vector<2x8x8xf32>
    %cst_23 = arith.constant dense<0.000000e+00> : vector<2x8xf32>
    %59 = vector.multi_reduction <add>, %58, %cst_23 [2] : vector<2x8x8xf32> to vector<2x8xf32>
    %60 = vector.shape_cast %59 : vector<2x8xf32> to vector<2x8x1xf32>
    %61 = tpu.reciprocal %60 {approx = true} : vector<2x8x1xf32> -> vector<2x8x1xf32>
    %62 = vector.broadcast %61 : vector<2x8x1xf32> to vector<2x8x8xf32>
    %63 = arith.mulf %58, %62 : vector<2x8x8xf32>
    %64 = arith.truncf %63 : vector<2x8x8xf32> to vector<2x8x8xbf16>
    %65 = arith.truncf %46 : vector<2x8x16xf32> to vector<2x8x16xbf16>
    "tpu.trace_start"() <{level = 10 : i32, message = "bqk,bkd->bqd"}> : () -> ()
    %cst_24 = arith.constant dense<0.000000e+00> : vector<2x8x16xf32>
    %66 = tpu.matmul %64, %65, %cst_24 {dimension_numbers = #tpu.dot_dimension_numbers<[2], [1], [1], [2], [0, 0, 0, 1, 1, 2], [0], [0]>} : vector<2x8x8xbf16>, vector<2x8x16xbf16>, vector<2x8x16xf32> -> vector<2x8x16xf32>
    "tpu.trace_stop"() : () -> ()
    %67 = vector.shape_cast %66 : vector<2x8x16xf32> to vector<16x16xf32>
    %68 = arith.truncf %67 : vector<16x16xf32> to vector<16x16xbf16>
    %c192 = arith.constant 192 : index
    %c0_25 = arith.constant 0 : index
    %69 = vector.load %arg1[%c192, %c0_25] : memref<400x128xbf16, #tpu.memory_space<vmem>>, vector<16x32xbf16>
    %cst_26 = arith.constant dense<0.000000e+00> : vector<16x32xf32>
    %70 = tpu.matmul %68, %69, %cst_26 {dimension_numbers = #tpu.dot_dimension_numbers<[1], [0], [0], [1], [0, 0, 1, 1], [], []>} : vector<16x16xbf16>, vector<16x32xbf16>, vector<16x32xf32> -> vector<16x32xf32>
    %c96 = arith.constant 96 : index
    %c0_27 = arith.constant 0 : index
    %71 = vector.load %arg1[%c96, %c0_27] : memref<400x128xbf16, #tpu.memory_space<vmem>>, vector<32x16xbf16>
    %cst_28 = arith.constant dense<0.000000e+00> : vector<16x16xf32>
    %72 = tpu.matmul %28, %71, %cst_28 {dimension_numbers = #tpu.dot_dimension_numbers<[1], [0], [0], [1], [0, 0, 1, 1], [], []>} : vector<16x32xbf16>, vector<32x16xbf16>, vector<16x16xf32> -> vector<16x16xf32>
    %c5 = arith.constant 5 : index
    %c0_29 = arith.constant 0 : index
    %73 = vector.load %arg2[%c5, %c0_29] : memref<19x128xf32, #tpu.memory_space<vmem>>, vector<1x16xf32>
    %74 = vector.broadcast %73 : vector<1x16xf32> to vector<16x16xf32>
    %75 = arith.addf %72, %74 : vector<16x16xf32>
    %76 = vector.shape_cast %75 : vector<16x16xf32> to vector<2x8x16xf32>
    %c128 = arith.constant 128 : index
    %c0_30 = arith.constant 0 : index
    %77 = vector.load %arg1[%c128, %c0_30] : memref<400x128xbf16, #tpu.memory_space<vmem>>, vector<32x16xbf16>
    %cst_31 = arith.constant dense<0.000000e+00> : vector<16x16xf32>
    %78 = tpu.matmul %28, %77, %cst_31 {dimension_numbers = #tpu.dot_dimension_numbers<[1], [0], [0], [1], [0, 0, 1, 1], [], []>} : vector<16x32xbf16>, vector<32x16xbf16>, vector<16x16xf32> -> vector<16x16xf32>
    %c6 = arith.constant 6 : index
    %c0_32 = arith.constant 0 : index
    %79 = vector.load %arg2[%c6, %c0_32] : memref<19x128xf32, #tpu.memory_space<vmem>>, vector<1x16xf32>
    %80 = vector.broadcast %79 : vector<1x16xf32> to vector<16x16xf32>
    %81 = arith.addf %78, %80 : vector<16x16xf32>
    %82 = vector.shape_cast %81 : vector<16x16xf32> to vector<2x8x16xf32>
    %c160 = arith.constant 160 : index
    %c0_33 = arith.constant 0 : index
    %83 = vector.load %arg1[%c160, %c0_33] : memref<400x128xbf16, #tpu.memory_space<vmem>>, vector<32x16xbf16>
    %cst_34 = arith.constant dense<0.000000e+00> : vector<16x16xf32>
    %84 = tpu.matmul %28, %83, %cst_34 {dimension_numbers = #tpu.dot_dimension_numbers<[1], [0], [0], [1], [0, 0, 1, 1], [], []>} : vector<16x32xbf16>, vector<32x16xbf16>, vector<16x16xf32> -> vector<16x16xf32>
    %c7 = arith.constant 7 : index
    %c0_35 = arith.constant 0 : index
    %85 = vector.load %arg2[%c7, %c0_35] : memref<19x128xf32, #tpu.memory_space<vmem>>, vector<1x16xf32>
    %86 = vector.broadcast %85 : vector<1x16xf32> to vector<16x16xf32>
    %87 = arith.addf %84, %86 : vector<16x16xf32>
    %88 = vector.shape_cast %87 : vector<16x16xf32> to vector<2x8x16xf32>
    %89 = arith.truncf %76 : vector<2x8x16xf32> to vector<2x8x16xbf16>
    %90 = arith.truncf %82 : vector<2x8x16xf32> to vector<2x8x16xbf16>
    "tpu.trace_start"() <{level = 10 : i32, message = "bqd,bkd->bqk"}> : () -> ()
    %cst_36 = arith.constant dense<0.000000e+00> : vector<2x8x8xf32>
    %91 = tpu.matmul %89, %90, %cst_36 {dimension_numbers = #tpu.dot_dimension_numbers<[2], [2], [1], [1], [0, 0, 0, 1, 1, 1], [0], [0]>} : vector<2x8x16xbf16>, vector<2x8x16xbf16>, vector<2x8x8xf32> -> vector<2x8x8xf32>
    "tpu.trace_stop"() : () -> ()
    %cst_37 = arith.constant 2.500000e-01 : f32
    %92 = vector.broadcast %cst_37 : f32 to vector<2x8x8xf32>
    %93 = arith.mulf %91, %92 : vector<2x8x8xf32>
    %94 = vector.broadcast %2 : vector<2x1x8xf32> to vector<2x8x8xf32>
    %95 = arith.addf %93, %94 : vector<2x8x8xf32>
    %cst_38 = arith.constant dense<0xFF800000> : vector<2x8xf32>
    %96 = vector.multi_reduction <maximumf>, %95, %cst_38 [2] : vector<2x8x8xf32> to vector<2x8xf32>
    %97 = vector.shape_cast %96 : vector<2x8xf32> to vector<2x8x1xf32>
    %98 = vector.broadcast %97 : vector<2x8x1xf32> to vector<2x8x8xf32>
    %99 = arith.subf %95, %98 : vector<2x8x8xf32>
    %100 = math.exp %99 : vector<2x8x8xf32>
    %cst_39 = arith.constant dense<0.000000e+00> : vector<2x8xf32>
    %101 = vector.multi_reduction <add>, %100, %cst_39 [2] : vector<2x8x8xf32> to vector<2x8xf32>
    %102 = vector.shape_cast %101 : vector<2x8xf32> to vector<2x8x1xf32>
    %103 = tpu.reciprocal %102 {approx = true} : vector<2x8x1xf32> -> vector<2x8x1xf32>
    %104 = vector.broadcast %103 : vector<2x8x1xf32> to vector<2x8x8xf32>
    %105 = arith.mulf %100, %104 : vector<2x8x8xf32>
    %106 = arith.truncf %105 : vector<2x8x8xf32> to vector<2x8x8xbf16>
    %107 = arith.truncf %88 : vector<2x8x16xf32> to vector<2x8x16xbf16>
    "tpu.trace_start"() <{level = 10 : i32, message = "bqk,bkd->bqd"}> : () -> ()
    %cst_40 = arith.constant dense<0.000000e+00> : vector<2x8x16xf32>
    %108 = tpu.matmul %106, %107, %cst_40 {dimension_numbers = #tpu.dot_dimension_numbers<[2], [1], [1], [2], [0, 0, 0, 1, 1, 2], [0], [0]>} : vector<2x8x8xbf16>, vector<2x8x16xbf16>, vector<2x8x16xf32> -> vector<2x8x16xf32>
    "tpu.trace_stop"() : () -> ()
    %109 = vector.shape_cast %108 : vector<2x8x16xf32> to vector<16x16xf32>
    %110 = arith.truncf %109 : vector<16x16xf32> to vector<16x16xbf16>
    %c208 = arith.constant 208 : index
    %c0_41 = arith.constant 0 : index
    %111 = vector.load %arg1[%c208, %c0_41] : memref<400x128xbf16, #tpu.memory_space<vmem>>, vector<16x32xbf16>
    %cst_42 = arith.constant dense<0.000000e+00> : vector<16x32xf32>
    %112 = tpu.matmul %110, %111, %cst_42 {dimension_numbers = #tpu.dot_dimension_numbers<[1], [0], [0], [1], [0, 0, 1, 1], [], []>} : vector<16x16xbf16>, vector<16x32xbf16>, vector<16x32xf32> -> vector<16x32xf32>
    %113 = arith.addf %70, %112 : vector<16x32xf32>
    %c8 = arith.constant 8 : index
    %c0_43 = arith.constant 0 : index
    %114 = vector.load %arg2[%c8, %c0_43] : memref<19x128xf32, #tpu.memory_space<vmem>>, vector<1x32xf32>
    %115 = vector.broadcast %114 : vector<1x32xf32> to vector<16x32xf32>
    %116 = arith.addf %113, %115 : vector<16x32xf32>
    %117 = arith.addf %27, %116 : vector<16x32xf32>
    %c9 = arith.constant 9 : index
    %c0_44 = arith.constant 0 : index
    %118 = vector.load %arg2[%c9, %c0_44] : memref<19x128xf32, #tpu.memory_space<vmem>>, vector<1x32xf32>
    %c10 = arith.constant 10 : index
    %c0_45 = arith.constant 0 : index
    %119 = vector.load %arg2[%c10, %c0_45] : memref<19x128xf32, #tpu.memory_space<vmem>>, vector<1x32xf32>
    %cst_46 = arith.constant dense<0.000000e+00> : vector<16xf32>
    %120 = vector.multi_reduction <add>, %117, %cst_46 [1] : vector<16x32xf32> to vector<16xf32>
    %121 = vector.shape_cast %120 : vector<16xf32> to vector<16x1xf32>
    %cst_47 = arith.constant 3.200000e+01 : f32
    %122 = vector.broadcast %cst_47 : f32 to vector<16x1xf32>
    %123 = arith.divf %121, %122 : vector<16x1xf32>
    %124 = vector.broadcast %123 : vector<16x1xf32> to vector<16x32xf32>
    %125 = arith.subf %117, %124 : vector<16x32xf32>
    %126 = arith.mulf %125, %125 : vector<16x32xf32>
    %cst_48 = arith.constant dense<0.000000e+00> : vector<16xf32>
    %127 = vector.multi_reduction <add>, %126, %cst_48 [1] : vector<16x32xf32> to vector<16xf32>
    %128 = vector.shape_cast %127 : vector<16xf32> to vector<16x1xf32>
    %cst_49 = arith.constant 3.200000e+01 : f32
    %129 = vector.broadcast %cst_49 : f32 to vector<16x1xf32>
    %130 = arith.divf %128, %129 : vector<16x1xf32>
    %131 = vector.broadcast %123 : vector<16x1xf32> to vector<16x32xf32>
    %132 = arith.subf %117, %131 : vector<16x32xf32>
    %cst_50 = arith.constant 9.99999996E-13 : f32
    %133 = vector.broadcast %cst_50 : f32 to vector<16x1xf32>
    %134 = arith.addf %130, %133 : vector<16x1xf32>
    %135 = math.rsqrt %134 : vector<16x1xf32>
    %136 = vector.broadcast %135 : vector<16x1xf32> to vector<16x32xf32>
    %137 = arith.mulf %132, %136 : vector<16x32xf32>
    %138 = vector.broadcast %118 : vector<1x32xf32> to vector<16x32xf32>
    %139 = arith.mulf %137, %138 : vector<16x32xf32>
    %140 = vector.broadcast %119 : vector<1x32xf32> to vector<16x32xf32>
    %141 = arith.addf %139, %140 : vector<16x32xf32>
    %142 = arith.truncf %141 : vector<16x32xf32> to vector<16x32xbf16>
    %c224 = arith.constant 224 : index
    %c0_51 = arith.constant 0 : index
    %143 = vector.load %arg1[%c224, %c0_51] : memref<400x128xbf16, #tpu.memory_space<vmem>>, vector<32x64xbf16>
    %cst_52 = arith.constant dense<0.000000e+00> : vector<16x64xf32>
    %144 = tpu.matmul %142, %143, %cst_52 {dimension_numbers = #tpu.dot_dimension_numbers<[1], [0], [0], [1], [0, 0, 1, 1], [], []>} : vector<16x32xbf16>, vector<32x64xbf16>, vector<16x64xf32> -> vector<16x64xf32>
    %c11 = arith.constant 11 : index
    %c0_53 = arith.constant 0 : index
    %145 = vector.load %arg2[%c11, %c0_53] : memref<19x128xf32, #tpu.memory_space<vmem>>, vector<1x64xf32>
    %146 = vector.broadcast %145 : vector<1x64xf32> to vector<16x64xf32>
    %147 = arith.addf %144, %146 : vector<16x64xf32>
    %148 = arith.mulf %147, %147 : vector<16x64xf32>
    %149 = arith.mulf %147, %148 : vector<16x64xf32>
    %cst_54 = arith.constant 4.471500e-02 : f32
    %150 = vector.broadcast %cst_54 : f32 to vector<16x64xf32>
    %151 = arith.mulf %150, %149 : vector<16x64xf32>
    %152 = arith.addf %147, %151 : vector<16x64xf32>
    %cst_55 = arith.constant 0.797884583 : f32
    %153 = vector.broadcast %cst_55 : f32 to vector<16x64xf32>
    %154 = arith.mulf %153, %152 : vector<16x64xf32>
    %155 = math.tanh %154 : vector<16x64xf32>
    %cst_56 = arith.constant 1.000000e+00 : f32
    %156 = vector.broadcast %cst_56 : f32 to vector<16x64xf32>
    %157 = arith.addf %156, %155 : vector<16x64xf32>
    %cst_57 = arith.constant 5.000000e-01 : f32
    %158 = vector.broadcast %cst_57 : f32 to vector<16x64xf32>
    %159 = arith.mulf %158, %157 : vector<16x64xf32>
    %160 = arith.mulf %147, %159 : vector<16x64xf32>
    %161 = arith.truncf %160 : vector<16x64xf32> to vector<16x64xbf16>
    %c256 = arith.constant 256 : index
    %c0_58 = arith.constant 0 : index
    %162 = vector.load %arg1[%c256, %c0_58] : memref<400x128xbf16, #tpu.memory_space<vmem>>, vector<64x32xbf16>
    %cst_59 = arith.constant dense<0.000000e+00> : vector<16x32xf32>
    %163 = tpu.matmul %161, %162, %cst_59 {dimension_numbers = #tpu.dot_dimension_numbers<[1], [0], [0], [1], [0, 0, 1, 1], [], []>} : vector<16x64xbf16>, vector<64x32xbf16>, vector<16x32xf32> -> vector<16x32xf32>
    %c12 = arith.constant 12 : index
    %c0_60 = arith.constant 0 : index
    %164 = vector.load %arg2[%c12, %c0_60] : memref<19x128xf32, #tpu.memory_space<vmem>>, vector<1x32xf32>
    %165 = vector.broadcast %164 : vector<1x32xf32> to vector<16x32xf32>
    %166 = arith.addf %163, %165 : vector<16x32xf32>
    %167 = arith.addf %141, %166 : vector<16x32xf32>
    %c13 = arith.constant 13 : index
    %c0_61 = arith.constant 0 : index
    %168 = vector.load %arg2[%c13, %c0_61] : memref<19x128xf32, #tpu.memory_space<vmem>>, vector<1x32xf32>
    %c14 = arith.constant 14 : index
    %c0_62 = arith.constant 0 : index
    %169 = vector.load %arg2[%c14, %c0_62] : memref<19x128xf32, #tpu.memory_space<vmem>>, vector<1x32xf32>
    %cst_63 = arith.constant dense<0.000000e+00> : vector<16xf32>
    %170 = vector.multi_reduction <add>, %167, %cst_63 [1] : vector<16x32xf32> to vector<16xf32>
    %171 = vector.shape_cast %170 : vector<16xf32> to vector<16x1xf32>
    %cst_64 = arith.constant 3.200000e+01 : f32
    %172 = vector.broadcast %cst_64 : f32 to vector<16x1xf32>
    %173 = arith.divf %171, %172 : vector<16x1xf32>
    %174 = vector.broadcast %173 : vector<16x1xf32> to vector<16x32xf32>
    %175 = arith.subf %167, %174 : vector<16x32xf32>
    %176 = arith.mulf %175, %175 : vector<16x32xf32>
    %cst_65 = arith.constant dense<0.000000e+00> : vector<16xf32>
    %177 = vector.multi_reduction <add>, %176, %cst_65 [1] : vector<16x32xf32> to vector<16xf32>
    %178 = vector.shape_cast %177 : vector<16xf32> to vector<16x1xf32>
    %cst_66 = arith.constant 3.200000e+01 : f32
    %179 = vector.broadcast %cst_66 : f32 to vector<16x1xf32>
    %180 = arith.divf %178, %179 : vector<16x1xf32>
    %181 = vector.broadcast %173 : vector<16x1xf32> to vector<16x32xf32>
    %182 = arith.subf %167, %181 : vector<16x32xf32>
    %cst_67 = arith.constant 9.99999996E-13 : f32
    %183 = vector.broadcast %cst_67 : f32 to vector<16x1xf32>
    %184 = arith.addf %180, %183 : vector<16x1xf32>
    %185 = math.rsqrt %184 : vector<16x1xf32>
    %186 = vector.broadcast %185 : vector<16x1xf32> to vector<16x32xf32>
    %187 = arith.mulf %182, %186 : vector<16x32xf32>
    %188 = vector.broadcast %168 : vector<1x32xf32> to vector<16x32xf32>
    %189 = arith.mulf %187, %188 : vector<16x32xf32>
    %190 = vector.broadcast %169 : vector<1x32xf32> to vector<16x32xf32>
    %191 = arith.addf %189, %190 : vector<16x32xf32>
    %192 = vector.shape_cast %191 : vector<16x32xf32> to vector<2x8x32xf32>
    %193 = vector.extract_strided_slice %192 {offsets = [0, 0, 0], sizes = [2, 1, 32], strides = [1, 1, 1]} : vector<2x8x32xf32> to vector<2x1x32xf32>
    %194 = vector.shape_cast %193 : vector<2x1x32xf32> to vector<2x32xf32>
    %c15 = arith.constant 15 : index
    %c0_68 = arith.constant 0 : index
    %195 = vector.load %arg2[%c15, %c0_68] : memref<19x128xf32, #tpu.memory_space<vmem>>, vector<1x16xf32>
    %196 = vector.broadcast %195 : vector<1x16xf32> to vector<2x16xf32>
    %197 = arith.mulf %3, %196 : vector<2x16xf32>
    %c16_69 = arith.constant 16 : index
    %c0_70 = arith.constant 0 : index
    %198 = vector.load %arg2[%c16_69, %c0_70] : memref<19x128xf32, #tpu.memory_space<vmem>>, vector<1x16xf32>
    %199 = vector.broadcast %198 : vector<1x16xf32> to vector<2x16xf32>
    %200 = arith.addf %197, %199 : vector<2x16xf32>
    %201 = arith.truncf %194 : vector<2x32xf32> to vector<2x32xbf16>
    %c320 = arith.constant 320 : index
    %c0_71 = arith.constant 0 : index
    %202 = vector.load %arg1[%c320, %c0_71] : memref<400x128xbf16, #tpu.memory_space<vmem>>, vector<32x32xbf16>
    %cst_72 = arith.constant dense<0.000000e+00> : vector<2x32xf32>
    %203 = tpu.matmul %201, %202, %cst_72 {dimension_numbers = #tpu.dot_dimension_numbers<[1], [0], [0], [1], [0, 0, 1, 1], [], []>} : vector<2x32xbf16>, vector<32x32xbf16>, vector<2x32xf32> -> vector<2x32xf32>
    %204 = arith.truncf %200 : vector<2x16xf32> to vector<2x16xbf16>
    %c352 = arith.constant 352 : index
    %c0_73 = arith.constant 0 : index
    %205 = vector.load %arg1[%c352, %c0_73] : memref<400x128xbf16, #tpu.memory_space<vmem>>, vector<16x32xbf16>
    %cst_74 = arith.constant dense<0.000000e+00> : vector<2x32xf32>
    %206 = tpu.matmul %204, %205, %cst_74 {dimension_numbers = #tpu.dot_dimension_numbers<[1], [0], [0], [1], [0, 0, 1, 1], [], []>} : vector<2x16xbf16>, vector<16x32xbf16>, vector<2x32xf32> -> vector<2x32xf32>
    %207 = arith.addf %203, %206 : vector<2x32xf32>
    %c17 = arith.constant 17 : index
    %c0_75 = arith.constant 0 : index
    %208 = vector.load %arg2[%c17, %c0_75] : memref<19x128xf32, #tpu.memory_space<vmem>>, vector<1x32xf32>
    %209 = vector.broadcast %208 : vector<1x32xf32> to vector<2x32xf32>
    %210 = arith.addf %207, %209 : vector<2x32xf32>
    %211 = arith.mulf %210, %210 : vector<2x32xf32>
    %212 = arith.mulf %210, %211 : vector<2x32xf32>
    %cst_76 = arith.constant 4.471500e-02 : f32
    %213 = vector.broadcast %cst_76 : f32 to vector<2x32xf32>
    %214 = arith.mulf %213, %212 : vector<2x32xf32>
    %215 = arith.addf %210, %214 : vector<2x32xf32>
    %cst_77 = arith.constant 0.797884583 : f32
    %216 = vector.broadcast %cst_77 : f32 to vector<2x32xf32>
    %217 = arith.mulf %216, %215 : vector<2x32xf32>
    %218 = math.tanh %217 : vector<2x32xf32>
    %cst_78 = arith.constant 1.000000e+00 : f32
    %219 = vector.broadcast %cst_78 : f32 to vector<2x32xf32>
    %220 = arith.addf %219, %218 : vector<2x32xf32>
    %cst_79 = arith.constant 5.000000e-01 : f32
    %221 = vector.broadcast %cst_79 : f32 to vector<2x32xf32>
    %222 = arith.mulf %221, %220 : vector<2x32xf32>
    %223 = arith.mulf %210, %222 : vector<2x32xf32>
    %224 = arith.truncf %223 : vector<2x32xf32> to vector<2x32xbf16>
    %c368 = arith.constant 368 : index
    %c0_80 = arith.constant 0 : index
    %225 = vector.load %arg1[%c368, %c0_80] : memref<400x128xbf16, #tpu.memory_space<vmem>>, vector<32x2xbf16>
    %cst_81 = arith.constant dense<0.000000e+00> : vector<2x2xf32>
    %226 = tpu.matmul %224, %225, %cst_81 {dimension_numbers = #tpu.dot_dimension_numbers<[1], [0], [0], [1], [0, 0, 1, 1], [], []>} : vector<2x32xbf16>, vector<32x2xbf16>, vector<2x2xf32> -> vector<2x2xf32>
    %c18_82 = arith.constant 18 : index
    %c0_83 = arith.constant 0 : index
    %227 = vector.load %arg2[%c18_82, %c0_83] : memref<19x128xf32, #tpu.memory_space<vmem>>, vector<1x2xf32>
    %228 = vector.broadcast %227 : vector<1x2xf32> to vector<2x2xf32>
    %229 = arith.addf %226, %228 : vector<2x2xf32>
    %cst_84 = arith.constant dense<0xFF800000> : vector<2xf32>
    %230 = vector.multi_reduction <maximumf>, %229, %cst_84 [1] : vector<2x2xf32> to vector<2xf32>
    %231 = vector.shape_cast %230 : vector<2xf32> to vector<2x1xf32>
    %232 = vector.broadcast %231 : vector<2x1xf32> to vector<2x2xf32>
    %233 = arith.subf %229, %232 : vector<2x2xf32>
    %234 = math.exp %233 : vector<2x2xf32>
    %cst_85 = arith.constant dense<0.000000e+00> : vector<2xf32>
    %235 = vector.multi_reduction <add>, %234, %cst_85 [1] : vector<2x2xf32> to vector<2xf32>
    %236 = vector.shape_cast %235 : vector<2xf32> to vector<2x1xf32>
    %237 = math.log %236 : vector<2x1xf32>
    %238 = arith.addf %231, %237 : vector<2x1xf32>
    %239 = vector.broadcast %238 : vector<2x1xf32> to vector<2x2xf32>
    %240 = arith.subf %229, %239 : vector<2x2xf32>
    %c0_86 = arith.constant 0 : index
    %c0_87 = arith.constant 0 : index
    %241 = vector.load %arg3[%c0_86, %c0_87] : memref<2x2xf32, #tpu.memory_space<vmem>>, vector<2x2xf32>
    tpu.vector_store %arg3[%c0_86, %c0_87], %240 {strides = array<i32>} : memref<2x2xf32, #tpu.memory_space<vmem>>, vector<2x2xf32>,
    return
  }
}

</mosaic_0001>

<bundles_post_ra>
// kernel: geoerx_forward.1
= control target key start
LH: loop header
LB: loop body
LE: loop exit
PB: predicated region body
PF: predicated region fallthrough
CT: control target
= control target key end

     0   :  { %vm45_vm0 = vcmask 261120   ;;  %s2205_s0 = inlined_call_operand.vmem [shape: f32[24,128], index: 0, kind: input, shape index: {}]   ;;  %s2206_s1 = inlined_call_operand.vmem [shape: bf16[400,128], index: 1, kind: input, shape index: {}]   ;;  %s2207_s2 = inlined_call_operand.vmem [shape: f32[19,128], index: 2, kind: input, shape index: {}]   ;;  %s2208_s3 = inlined_call_operand.hbm [shape: f32[2,2], index: 3, kind: output, shape index: {}]  }
   0x1   :  { %v16_v0 = vld [vmem:[%s2205_s0] sm:$0xff]  ;;  %v17_v1 = vld [vmem:[%s2205_s0 + $0x8] sm:$0xff] }
   0x2   :  { %v46_v2 = vsel %vm45_vm0, %v16_v0, 0.0  ;;  %v49_v3 = vsel %vm45_vm0, %v17_v1, 0.0 }
   0x3   :  { %47 = vadd.xlane.f32.xlu0 %v46_v2 }
   0x7   :  { %50 = vadd.xlane.f32.xlu0 %v49_v3 }
   0x8   :  { %8 = vsyncpa [#allocation3], 0  ;;  %v1790_v14 = vld [vmem:[%s2206_s1 + $0x8] sm:$0xff]   ;;  %v1791_v15 = vld [vmem:[%s2206_s1 + $0x18] sm:$0xff]   ;;  %v1875_v16 = vmov 0.0   ;;  %vm1876_vm1 = vmmov 0  }
   0x9   :  { %1636 = vmatprep.subr.bf16.mxu0 %v1875_v16  ;;  %1644 = vmatprep.subr.bf16.mxu1 %v1875_v16  ;;  %v1792_v17 = vld [vmem:[%s2206_s1] sm:$0xff]   ;;  %v1793_v18 = vld [vmem:[%s2206_s1 + $0x10] sm:$0xff]   ;;  %v1794_v35 = vld [vmem:[%s2206_s1 + $0x28] sm:$0xff]   ;;  %vm279_vm2 = vcmask 130048   ;;  %vm416_vm3 = vcmask 1043456   ;;  %vm386_vm4 = vcmask 64512  }
   0xa   :  { %1637 = vmatpush3.bf16.msra.mxu0 %v1790_v14  ;;  %1645 = vmatpush3.bf16.msra.mxu1 %v1791_v15  ;;  %v1517_v27 = vld [vmem:[%s2207_s2] ss:$0 sm:$0xff]  ;;  %v1518_v31 = vld [vmem:[%s2207_s2 + $0x1] ss:$0 sm:$0xff]  ;;  %v1523_v38 = vld [vmem:[%s2207_s2 + $0x3] ss:$0 sm:$0xff] }
   0xb   :  { %1638 = vmatprep.subr.bf16.mxu0 %v1875_v16  ;;  %1646 = vmatprep.subr.bf16.mxu1 %v1875_v16  ;;  %v1795_v37 = vld [vmem:[%s2206_s1 + $0x20] sm:$0xff]   ;;  %vm1187_vm5 = vcmask 523264   ;;  %vm1349_vm6 = vcmask 1041409   ;;  %vm1487_vm7 = vcmask 9216  }
   0xc   :  { %1640 = vmatprep.mubr.msk.bf16.mxu0 %vm1876_vm1, %v1875_v16  ;;  %1648 = vmatprep.mubr.msk.bf16.mxu1 %vm1876_vm1, %v1875_v16  ;;  %v1519_v45 = vld [vmem:[%s2207_s2 + $0x2] ss:$0 sm:$0xff]  ;;  %v1527_v52 = vld [vmem:[%s2207_s2 + $0x4] ss:$0 sm:$0xff] }
   0xe   :  { %1639 = vmatpush3.bf16.msra.mxu0 %v1792_v17  ;;  %1647 = vmatpush3.bf16.msra.mxu1 %v1793_v18 }
   0xf   :  { %1652 = vmatprep.subr.bf16.mxu0 %v1875_v16  ;;  %1660 = vmatprep.subr.bf16.mxu1 %v1875_v16 }
  0x8c   :  { %v48_v4 = vpop.xlane.xlu0 %47 }
  0x8d   :  { %v53_v5 = vmul.f32 0.03125, %v48_v4 }
  0x8f   :  { %v55_v6 = vsub.f32 %v16_v0, %v53_v5  ;;  %v1877_v5 = vmov 1966171168  }
  0x90   :  { %v51_v7 = vpop.xlane.xlu0 %50 }
  0x91   :  { %v54_v8 = vmul.f32 0.03125, %v51_v7  ;;  %v57_v9 = vmul.f32 %v55_v6, %v55_v6  ;;  %v31_v7 = vlaneseq }
  0x93   :  { %v56_v10 = vsub.f32 %v17_v1, %v54_v8  ;;  %v59_v11 = vsel %vm45_vm0, %v57_v9, 0.0  ;;  %v32_v9 = vshrl.u32 %v31_v7, 7 }
  0x94   :  { %60 = vadd.xlane.f32.xlu1 %v59_v11  ;;  %v1516_v11 = vld.sshfl [vmem:[%s2205_s0 + $0x10] sm:$0x11 pattern:$0x75316420] }
  0x95   :  { %v58_v12 = vmul.f32 %v56_v10, %v56_v10  ;;  %v27_v14 = vcombine.high %v1516_v11, %v1516_v11 }
  0x97   :  { %v62_v13 = vsel %vm45_vm0, %v58_v12, 0.0 }
  0x98   :  { %63 = vadd.xlane.f32.xlu1 %v62_v13  ;;  %v376_v13 = vsub.s32 0, %v32_v9 }
 0x11d   :  { %v61_v19 = vpop.xlane.xlu1 %60 }
 0x11e   :  { %v65_v20 = vmul.f32 0.03125, %v61_v19 }
 0x120   :  { %v67_v21 = vadd.f32 1e-12, %v65_v20 }
 0x121   :  { %v64_v22 = vpop.xlane.xlu1 %63 }
 0x122   :  { %1815 = vrsqrt.f32 %v67_v21  ;;  %v66_v23 = vmul.f32 0.03125, %v64_v22 }
 0x124   :  { %v68_v24 = vadd.f32 1e-12, %v66_v23 }
 0x126   :  { %1817 = vrsqrt.f32 %v68_v24 }
 0x12f   :  { %v1816_v25 = vpop.eup %1815 }
 0x130   :  { %v71_v26 = vmul.f32 %v1816_v25, %v55_v6  ;;  %v29_v6 = vunpack.c.l.s4 %v1877_v5 }
 0x132   :  { %v77_v29 = vmul.f32 %v1517_v27, %v71_v26  ;;  %v30_v8 = vunpack.c.0.s8 %v29_v6 }
 0x133   :  { %v1818_v28 = vpop.eup %1817 }
 0x134   :  { %v72_v30 = vmul.f32 %v1818_v28, %v56_v10  ;;  %v1937_v33 = vadd.f32 %v1518_v31, %v77_v29  ;;  %v33_v10 = vsub.s32 %v30_v8, %v32_v9 }
 0x136   :  { %v78_v32 = vmul.f32 %v1517_v27, %v72_v30  ;;  %v34_v12 = vrot.slane %v1516_v11, %v33_v10  ;;  %v41_v17 = vrot.slane %v27_v14, %v33_v10  ;;  %v1535_v14 = vld [vmem:[%s2207_s2 + $0x5] ss:$0 sm:$0xff] }
 0x138   :  { %v1939_v34 = vadd.f32 %v1518_v31, %v78_v32  ;;  %v1991_v15 = vrot.slane %v34_v12, %v376_v13  ;;  %v1994_v22 = vrot.slane %v41_v17, %v376_v13  ;;  %v1543_v12 = vld [vmem:[%s2207_s2 + $0x7] ss:$0 sm:$0xff] }
 0x13a   :  { %v1946_v36 = vpack.c.bf16 %v1939_v34, %v1937_v33 }
 0x13c   :  { %1641 = vmatmul.mubr.msk.bf16.vlgmr.msra.gmra.mxu0 %vm45_vm0, %v1946_v36  ;;  %1649 = vmatmul.mubr.msk.bf16.vlgmr.msra.gmra.mxu1 %vm45_vm0, %v1946_v36 }
 0x13d   :  { %1653 = vmatpush3.bf16.msra.mxu0 %v1794_v35  ;;  %1656 = vmatprep.mubr.msk.bf16.mxu0 %vm1876_vm1, %v1875_v16 }
 0x13e   :  { %1654 = vmatprep.subr.bf16.mxu0 %v1875_v16  ;;  %1662 = vmatprep.mubr.msk.bf16.mxu1 %vm1876_vm1, %v1875_v16 }
 0x141   :  { %1655 = vmatpush3.bf16.msra.mxu0 %v1795_v37 }
 0x142   :  { %1666 = vmatprep.subr.bf16.mxu0 %v1875_v16 }
 0x144   :  { %1657 = vmatmul.mubr.msk.bf16.vlgmr.msra.gmra.mxu0 %vm45_vm0, %v1946_v36 }
 0x145   :  { %1668 = vmatprep.mubr.msk.bf16.mxu0 %vm1876_vm1, %v1875_v16 }
 0x1fc   :  { %v144_v39 = vpop.f32.mrf.mxu0  ;;  %v206_v40 = vpop.f32.mrf.mxu1 }
 0x1fd   :  { %v207_v41 = vadd.f32 %v1523_v38, %v206_v40  ;;  %v145_v53 = vadd.f32 %v1519_v45, %v144_v39 }
 0x1fe   :  { %v1642_v42 = vpop.f32.mrf.mxu0  ;;  %v1650_v43 = vpop.f32.mrf.mxu1 }
 0x1ff   :  { %v277_v44 = vpack.c.bf16 %v207_v41, %v207_v41  ;;  %v275_v59 = vpack.c.bf16 %v145_v53, %v145_v53 }
 0x200   :  { %v147_v46 = vpop.f32.mrf.mxu0  ;;  %v209_v47 = vpop.f32.mrf.mxu1 }
 0x201   :  { %v284_v48 = vsel %vm279_vm2, %v277_v44, 0  ;;  %v210_v49 = vadd.f32 %v1523_v38, %v209_v47  ;;  %v148_v60 = vadd.f32 %v1519_v45, %v147_v46 }
 0x202   :  { %v1643_v50 = vpop.f32.mrf.mxu0  ;;  %v1651_v51 = vpop.f32.mrf.mxu1  ;;  %1661 = vmatpush3.bf16.xpose.msra.mxu1 %v284_v48 }
 0x203   :  { %v278_v54 = vpack.c.bf16 %v210_v49, %v210_v49  ;;  %1672 = vmatprep.subr.bf16.mxu1 %v1875_v16  ;;  %v276_v2 = vpack.c.bf16 %v148_v60, %v148_v60  ;;  %v1796_v50 = vld [vmem:[%s2206_s1 + $0x38] sm:$0xff]  }
 0x204   :  { %v268_v55 = vpop.f32.mrf.mxu0 }
 0x205   :  { %v330_v56 = vsel %vm279_vm2, %v278_v54, 0  ;;  %v269_v57 = vadd.f32 %v1527_v52, %v268_v55  ;;  %v1797_v54 = vld [vmem:[%s2206_s1 + $0x30] sm:$0xff]   ;;  %v1798_v55 = vld [vmem:[%s2206_s1 + $0x48] sm:$0xff]  }
 0x206   :  { %v1658_v58 = vpop.f32.mrf.mxu0  ;;  %1667 = vmatpush3.bf16.xpose.msra.mxu0 %v330_v56 }
 0x207   :  { %v411_v61 = vpack.c.bf16 %v269_v57, %v269_v57  ;;  %1678 = vmatprep.subr.bf16.mxu0 %v1875_v16  ;;  %v1799_v57 = vld [vmem:[%s2206_s1 + $0x40] sm:$0xff]   ;;  %v1800_v58 = vld [vmem:[%s2206_s1 + $0x58] sm:$0xff]  }
 0x208   :  { %v271_v62 = vpop.f32.mrf.mxu0 }
 0x209   :  { %v418_v63 = vsel %vm416_vm3, %v411_v61, 0  ;;  %v272_v0 = vadd.f32 %v1527_v52, %v271_v62  ;;  %1663 = vmatmul.mubr.msk.bf16.vlgmr.msra.gmra.mxu1 %vm279_vm2, %v275_v59  ;;  %v1801_v59 = vld [vmem:[%s2206_s1 + $0x50] sm:$0xff]  }
 0x20a   :  { %v1659_v1 = vpop.f32.mrf.mxu0  ;;  %1673 = vmatpush3.bf16.msra.mxu1 %v418_v63  ;;  %1674 = vmatprep.mubr.msk.bf16.mxu1 %vm1876_vm1, %v1875_v16 }
 0x20b   :  { %v412_v3 = vpack.c.bf16 %v272_v0, %v272_v0  ;;  %1684 = vmatprep.subr.bf16.mxu1 %v1875_v16 }
 0x20d   :  { %v464_v4 = vsel %vm416_vm3, %v412_v3, 0  ;;  %1669 = vmatmul.mubr.msk.bf16.vlgmr.msra.gmra.mxu0 %vm279_vm2, %v276_v2 }
 0x20e   :  { %1679 = vmatpush3.bf16.msra.mxu0 %v464_v4  ;;  %1680 = vmatprep.mubr.msk.bf16.mxu0 %vm1876_vm1, %v1875_v16 }
 0x20f   :  { %1692 = vmatprep.subr.bf16.mxu0 %v1875_v16 }
 0x2c9   :  { %v320_v18 = vpop.f32.mrf.mxu1 }
 0x2ca   :  { %v372_v19 = vmul.f32 0.25, %v320_v18 }
 0x2cb   :  { %v1664_v20 = vpop.f32.mrf.mxu1 }
 0x2cc   :  { %v384_v21 = vadd.f32 %v1991_v15, %v372_v19 }
 0x2cd   :  { %v323_v23 = vpop.f32.mrf.mxu1  ;;  %v366_v24 = vpop.f32.mrf.mxu0 }
 0x2ce   :  { %v373_v25 = vmul.f32 0.25, %v366_v24  ;;  %v387_v26 = vsel %vm386_vm4, %v384_v21, -inf }
 0x2cf   :  { %388 = vmax.xlane.f32.xlu1 %v387_v26  ;;  %v1665_v27 = vpop.f32.mrf.mxu1  ;;  %v1670_v28 = vpop.f32.mrf.mxu0 }
 0x2d0   :  { %v385_v29 = vadd.f32 %v1994_v22, %v373_v25 }
 0x2d1   :  { %v369_v30 = vpop.f32.mrf.mxu0 }
 0x2d2   :  { %v390_v31 = vsel %vm386_vm4, %v385_v29, -inf }
 0x2d3   :  { %391 = vmax.xlane.f32.xlu0 %v390_v31  ;;  %v1671_v32 = vpop.f32.mrf.mxu0 }
 0x358   :  { %v389_v35 = vpop.xlane.xlu1 %388 }
 0x359   :  { %v393_v37 = vsub.f32 %v384_v21, %v389_v35 }
 0x35b   :  { %v395_v38 = vmul.f32 1.442695, %v393_v37 }
 0x35c   :  { %v392_v39 = vpop.xlane.xlu0 %391 }
 0x35d   :  { %1819 = vpow2.f32 %v395_v38  ;;  %v394_v40 = vsub.f32 %v385_v29, %v392_v39 }
 0x35f   :  { %v397_v41 = vmul.f32 1.442695, %v394_v40 }
 0x361   :  { %1821 = vpow2.f32 %v397_v41 }
 0x36a   :  { %v1820_v42 = vpop.eup %1819 }
 0x36b   :  { %v399_v43 = vsel %vm386_vm4, %v1820_v42, 0.0 }
 0x36c   :  { %400 = vadd.xlane.f32.xlu1 %v399_v43 }
 0x36e   :  { %v1822_v44 = vpop.eup %1821 }
 0x36f   :  { %v402_v45 = vsel %vm386_vm4, %v1822_v44, 0.0 }
 0x370   :  { %403 = vadd.xlane.f32.xlu0 %v402_v45 }
 0x3f5   :  { %v401_v46 = vpop.xlane.xlu1 %400 }
 0x3f6   :  { %1823 = vrcp.f32 %v401_v46 }
 0x3f9   :  { %v404_v47 = vpop.xlane.xlu0 %403 }
 0x3fa   :  { %1825 = vrcp.f32 %v404_v47 }
 0x403   :  { %v1824_v48 = vpop.eup %1823 }
 0x404   :  { %v407_v49 = vmul.f32 %v1824_v48, %v1820_v42 }
 0x406   :  { %v409_v51 = vpack.c.bf16 %v407_v49, %v407_v49 }
 0x407   :  { %v1826_v52 = vpop.eup %1825 }
 0x408   :  { %1675 = vmatmul.mubr.msk.bf16.vlgmr.msra.gmra.mxu1 %vm386_vm4, %v409_v51  ;;  %v408_v53 = vmul.f32 %v1826_v52, %v1822_v44 }
 0x409   :  { %1685 = vmatpush3.bf16.msra.mxu1 %v1796_v50  ;;  %1688 = vmatprep.mubr.msk.bf16.mxu1 %vm1876_vm1, %v1875_v16 }
 0x40a   :  { %v410_v56 = vpack.c.bf16 %v408_v53, %v408_v53  ;;  %1686 = vmatprep.subr.bf16.mxu1 %v1875_v16 }
 0x40c   :  { %1681 = vmatmul.mubr.msk.bf16.vlgmr.msra.gmra.mxu0 %vm386_vm4, %v410_v56 }
 0x40d   :  { %1687 = vmatpush3.bf16.msra.mxu1 %v1797_v54  ;;  %1693 = vmatpush3.bf16.msra.mxu0 %v1798_v55 }
 0x40e   :  { %1694 = vmatprep.subr.bf16.mxu0 %v1875_v16  ;;  %1700 = vmatprep.subr.bf16.mxu1 %v1875_v16 }
 0x40f   :  { %1696 = vmatprep.mubr.msk.bf16.mxu0 %vm1876_vm1, %v1875_v16 }
 0x410   :  { %1689 = vmatmul.mubr.msk.bf16.vlgmr.msra.gmra.mxu1 %vm45_vm0, %v1946_v36 }
 0x411   :  { %1695 = vmatpush3.bf16.msra.mxu0 %v1799_v57  ;;  %1701 = vmatpush3.bf16.msra.mxu1 %v1800_v58 }
 0x412   :  { %1702 = vmatprep.subr.bf16.mxu1 %v1875_v16  ;;  %1704 = vmatprep.mubr.msk.bf16.mxu1 %vm1876_vm1, %v1875_v16 }
 0x413   :  { %1708 = vmatprep.subr.bf16.mxu0 %v1875_v16 }
 0x414   :  { %1697 = vmatmul.mubr.msk.bf16.vlgmr.msra.gmra.mxu0 %vm45_vm0, %v1946_v36 }
 0x415   :  { %1703 = vmatpush3.bf16.msra.mxu1 %v1801_v59  ;;  %1710 = vmatprep.mubr.msk.bf16.mxu0 %vm1876_vm1, %v1875_v16 }
 0x416   :  { %1714 = vmatprep.subr.bf16.mxu1 %v1875_v16 }
 0x418   :  { %1705 = vmatmul.mubr.msk.bf16.vlgmr.msra.gmra.mxu1 %vm45_vm0, %v1946_v36  ;;  %v1539_v36 = vld [vmem:[%s2207_s2 + $0x6] ss:$0 sm:$0xff] }
 0x419   :  { %1716 = vmatprep.mubr.msk.bf16.mxu1 %vm1876_vm1, %v1875_v16 }
 0x4c8   :  { %v2043_v60 = vpop.f32.mrf.mxu1 }
 0x4ca   :  { %v1676_v61 = vpop.f32.mrf.mxu1 }
 0x4cc   :  { %v457_v62 = vpop.f32.mrf.mxu1  ;;  %v2045_v63 = vpop.f32.mrf.mxu0 }
 0x4cd   :  { %v506_v0 = vpack.c.bf16 %v2045_v63, %v2043_v60 }
 0x4ce   :  { %v1677_v1 = vpop.f32.mrf.mxu1  ;;  %v1682_v2 = vpop.f32.mrf.mxu0 }
 0x4d0   :  { %v503_v3 = vpop.f32.mrf.mxu0  ;;  %v564_v4 = vpop.f32.mrf.mxu1 }
 0x4d1   :  { %v565_v25 = vadd.f32 %v1535_v14, %v564_v4 }
 0x4d2   :  { %v1683_v5 = vpop.f32.mrf.mxu0  ;;  %v1690_v6 = vpop.f32.mrf.mxu1 }
 0x4d3   :  { %v695_v32 = vpack.c.bf16 %v565_v25, %v565_v25  ;;  %v1555_v25 = vld [vmem:[%s2207_s2 + $0x8] ss:$0 sm:$0xff] }
 0x4d4   :  { %v567_v7 = vpop.f32.mrf.mxu1  ;;  %v626_v8 = vpop.f32.mrf.mxu0 }
 0x4d5   :  { %v627_v9 = vadd.f32 %v1539_v36, %v626_v8  ;;  %v568_v35 = vadd.f32 %v1535_v14, %v567_v7  ;;  %v1802_v8 = vld [vmem:[%s2206_s1 + $0x60] sm:$0xff]  }
 0x4d6   :  { %v1691_v10 = vpop.f32.mrf.mxu1  ;;  %v1698_v11 = vpop.f32.mrf.mxu0 }
 0x4d7   :  { %v697_v13 = vpack.c.bf16 %v627_v9, %v627_v9  ;;  %v696_v39 = vpack.c.bf16 %v568_v35, %v568_v35  ;;  %v1803_v10 = vld [vmem:[%s2206_s1 + $0x68] sm:$0xff]  }
 0x4d8   :  { %v629_v17 = vpop.f32.mrf.mxu0  ;;  %v688_v18 = vpop.f32.mrf.mxu1 }
 0x4d9   :  { %v703_v19 = vsel %vm279_vm2, %v697_v13, 0  ;;  %v630_v20 = vadd.f32 %v1539_v36, %v629_v17  ;;  %v689_v21 = vadd.f32 %v1543_v12, %v688_v18 }
 0x4da   :  { %v1699_v23 = vpop.f32.mrf.mxu0  ;;  %v1706_v24 = vpop.f32.mrf.mxu1  ;;  %1709 = vmatpush3.bf16.xpose.msra.mxu0 %v703_v19 }
 0x4db   :  { %v698_v26 = vpack.c.bf16 %v630_v20, %v630_v20  ;;  %1720 = vmatprep.subr.bf16.mxu0 %v1875_v16  ;;  %v819_v29 = vpack.c.bf16 %v689_v21, %v689_v21 }
 0x4dc   :  { %v691_v27 = vpop.f32.mrf.mxu1 }
 0x4dd   :  { %v749_v28 = vsel %vm279_vm2, %v698_v26, 0  ;;  %v692_v30 = vadd.f32 %v1543_v12, %v691_v27  ;;  %v825_v37 = vsel %vm416_vm3, %v819_v29, 0 }
 0x4de   :  { %v1707_v31 = vpop.f32.mrf.mxu1  ;;  %1715 = vmatpush3.bf16.xpose.msra.mxu1 %v749_v28 }
 0x4df   :  { %1726 = vmatprep.subr.bf16.mxu1 %v1875_v16  ;;  %v820_v38 = vpack.c.bf16 %v692_v30, %v692_v30 }
 0x4e1   :  { %1711 = vmatmul.mubr.msk.bf16.vlgmr.msra.gmra.mxu0 %vm279_vm2, %v695_v32  ;;  %v871_v40 = vsel %vm416_vm3, %v820_v38, 0 }
 0x4e2   :  { %1721 = vmatpush3.bf16.msra.mxu0 %v825_v37  ;;  %1722 = vmatprep.mubr.msk.bf16.mxu0 %vm1876_vm1, %v1875_v16 }
 0x4e3   :  { %1732 = vmatprep.subr.bf16.mxu0 %v1875_v16 }
 0x4e5   :  { %1717 = vmatmul.mubr.msk.bf16.vlgmr.msra.gmra.mxu1 %vm279_vm2, %v696_v39 }
 0x4e6   :  { %1727 = vmatpush3.bf16.msra.mxu1 %v871_v40  ;;  %1728 = vmatprep.mubr.msk.bf16.mxu1 %vm1876_vm1, %v1875_v16 }
 0x4e7   :  { %1738 = vmatprep.subr.bf16.mxu1 %v1875_v16 }
 0x5a1   :  { %v739_v41 = vpop.f32.mrf.mxu0 }
 0x5a2   :  { %v791_v42 = vmul.f32 0.25, %v739_v41 }
 0x5a3   :  { %v1712_v43 = vpop.f32.mrf.mxu0 }
 0x5a4   :  { %v793_v44 = vadd.f32 %v791_v42, %v1991_v15 }
 0x5a5   :  { %v742_v45 = vpop.f32.mrf.mxu0  ;;  %v785_v46 = vpop.f32.mrf.mxu1 }
 0x5a6   :  { %v792_v47 = vmul.f32 0.25, %v785_v46  ;;  %v795_v48 = vsel %vm386_vm4, %v793_v44, -inf }
 0x5a7   :  { %v1718_v49 = vpop.f32.mrf.mxu1  ;;  %796 = vmax.xlane.f32.xlu0 %v795_v48  ;;  %v1713_v50 = vpop.f32.mrf.mxu0 }
 0x5a8   :  { %v794_v51 = vadd.f32 %v792_v47, %v1994_v22  ;;  %v1805_v49 = vld [vmem:[%s2206_s1 + $0x70] sm:$0xff]  }
 0x5a9   :  { %v788_v52 = vpop.f32.mrf.mxu1 }
 0x5aa   :  { %v798_v53 = vsel %vm386_vm4, %v794_v51, -inf }
 0x5ab   :  { %799 = vmax.xlane.f32.xlu1 %v798_v53  ;;  %v1719_v54 = vpop.f32.mrf.mxu1 }
 0x630   :  { %v797_v55 = vpop.xlane.xlu0 %796 }
 0x631   :  { %v801_v56 = vsub.f32 %v793_v44, %v797_v55 }
 0x633   :  { %v803_v57 = vmul.f32 1.442695, %v801_v56 }
 0x634   :  { %v800_v58 = vpop.xlane.xlu1 %799 }
 0x635   :  { %1827 = vpow2.f32 %v803_v57  ;;  %v802_v15 = vsub.f32 %v794_v51, %v800_v58  ;;  %v1556_v58 = vld [vmem:[%s2207_s2 + $0x9] ss:$0 sm:$0xff] }
 0x637   :  { %v805_v59 = vmul.f32 1.442695, %v802_v15 }
 0x639   :  { %1829 = vpow2.f32 %v805_v59 }
 0x642   :  { %v1828_v61 = vpop.eup %1827 }
 0x643   :  { %v807_v62 = vsel %vm386_vm4, %v1828_v61, 0.0 }
 0x644   :  { %808 = vadd.xlane.f32.xlu0 %v807_v62  ;;  %v1557_v62 = vld [vmem:[%s2207_s2 + $0xa] ss:$0 sm:$0xff] }
 0x646   :  { %v1830_v1 = vpop.eup %1829 }
 0x647   :  { %v810_v22 = vsel %vm386_vm4, %v1830_v1, 0.0 }
 0x648   :  { %811 = vadd.xlane.f32.xlu1 %v810_v22 }
 0x6cd   :  { %v809_v2 = vpop.xlane.xlu0 %808 }
 0x6ce   :  { %1831 = vrcp.f32 %v809_v2 }
 0x6d1   :  { %v812_v3 = vpop.xlane.xlu1 %811 }
 0x6d2   :  { %1833 = vrcp.f32 %v812_v3 }
 0x6db   :  { %v1832_v4 = vpop.eup %1831 }
 0x6dc   :  { %v815_v5 = vmul.f32 %v1832_v4, %v1828_v61  ;;  %v1806_v4 = vld [vmem:[%s2206_s1 + $0x98] sm:$0xff]  }
 0x6de   :  { %v817_v6 = vpack.c.bf16 %v815_v5, %v815_v5  ;;  %v1807_v5 = vld [vmem:[%s2206_s1 + $0x90] sm:$0xff]  }
 0x6df   :  { %v1834_v36 = vpop.eup %1833 }
 0x6e0   :  { %1723 = vmatmul.mubr.msk.bf16.vlgmr.msra.gmra.mxu0 %vm386_vm4, %v817_v6  ;;  %v816_v7 = vmul.f32 %v1834_v36, %v1830_v1  ;;  %v1808_v6 = vld [vmem:[%s2206_s1 + $0x88] sm:$0xff]   ;;  %v1809_v36 = vld [vmem:[%s2206_s1 + $0x80] sm:$0xff]  }
 0x6e1   :  { %1734 = vmatprep.mubr.msk.bf16.mxu0 %vm1876_vm1, %v1875_v16  ;;  %1733 = vmatpush3.bf16.msra.mxu0 %v1803_v10 }
 0x6e2   :  { %v818_v9 = vpack.c.bf16 %v816_v7, %v816_v7  ;;  %1744 = vmatprep.subr.bf16.mxu0 %v1875_v16  ;;  %v1558_v7 = vld [vmem:[%s2207_s2 + $0xb] ss:$0 sm:$0xff] }
 0x6e4   :  { %1729 = vmatmul.mubr.msk.bf16.vlgmr.msra.gmra.mxu1 %vm386_vm4, %v818_v9 }
 0x6e5   :  { %1739 = vmatpush3.bf16.msra.mxu1 %v1802_v8  ;;  %1740 = vmatprep.mubr.msk.bf16.mxu1 %vm1876_vm1, %v1875_v16 }
 0x6e6   :  { %1752 = vmatprep.subr.bf16.mxu1 %v1875_v16 }
 0x6ec   :  { %1741 = vmatmul.mubr.msk.bf16.vlgmr.msra.gmra.mxu1 %vm279_vm2, %v506_v0 }
 0x6ed   :  { %1760 = vmatprep.mubr.msk.bf16.mxu1 %vm1876_vm1, %v1875_v16  ;;  %1753 = vmatpush3.bf16.msra.mxu1 %v1806_v4 }
 0x6ee   :  { %1754 = vmatprep.subr.bf16.mxu1 %v1875_v16 }
 0x6f1   :  { %1755 = vmatpush3.bf16.msra.mxu1 %v1807_v5 }
 0x6f2   :  { %1756 = vmatprep.subr.bf16.mxu1 %v1875_v16 }
 0x6f5   :  { %1757 = vmatpush3.bf16.msra.mxu1 %v1808_v6 }
 0x6f6   :  { %1758 = vmatprep.subr.bf16.mxu1 %v1875_v16 }
 0x6f9   :  { %1759 = vmatpush3.bf16.msra.mxu1 %v1809_v36 }
 0x6fa   :  { %1778 = vmatprep.subr.bf16.mxu1 %v1875_v16 }
 0x7a0   :  { %v861_v11 = vpop.f32.mrf.mxu0 }
 0x7a2   :  { %v1724_v12 = vpop.f32.mrf.mxu0 }
 0x7a4   :  { %v864_v13 = vpop.f32.mrf.mxu0  ;;  %v907_v14 = vpop.f32.mrf.mxu1 }
 0x7a5   :  { %v913_v17 = vpack.c.bf16 %v907_v14, %v861_v11 }
 0x7a6   :  { %v1725_v18 = vpop.f32.mrf.mxu0  ;;  %v1730_v19 = vpop.f32.mrf.mxu1 }
 0x7a7   :  { %1735 = vmatmul.mubr.msk.bf16.vlgmr.msra.gmra.mxu0 %vm279_vm2, %v913_v17 }
 0x7a8   :  { %v910_v60 = vpop.f32.mrf.mxu1  ;;  %1748 = vmatprep.mubr.msk.bf16.mxu0 %vm1876_vm1, %v1875_v16 }
 0x7aa   :  { %v1731_v63 = vpop.f32.mrf.mxu1 }
 0x7ac   :  { %v1009_v0 = vpop.f32.mrf.mxu1 }
 0x7ae   :  { %v1742_v20 = vpop.f32.mrf.mxu1 }
 0x7b0   :  { %v1012_v21 = vpop.f32.mrf.mxu1 }
 0x7b2   :  { %v1743_v23 = vpop.f32.mrf.mxu1 }
 0x867   :  { %v959_v24 = vpop.f32.mrf.mxu0 }
 0x868   :  { %v1010_v26 = vadd.f32 %v1009_v0, %v959_v24 }
 0x869   :  { %v1736_v27 = vpop.f32.mrf.mxu0 }
 0x86a   :  { %v1021_v28 = vadd.f32 %v1555_v25, %v1010_v26 }
 0x86b   :  { %v962_v29 = vpop.f32.mrf.mxu0 }
 0x86c   :  { %v1013_v30 = vadd.f32 %v1012_v21, %v962_v29  ;;  %v1023_v31 = vadd.f32 %v1021_v28, %v1937_v33 }
 0x86d   :  { %v1737_v32 = vpop.f32.mrf.mxu0 }
 0x86e   :  { %v1022_v35 = vadd.f32 %v1555_v25, %v1013_v30  ;;  %v1027_v37 = vsel %vm45_vm0, %v1023_v31, 0.0 }
 0x86f   :  { %1028 = vadd.xlane.f32.xlu0 %v1027_v37 }
 0x870   :  { %v1024_v38 = vadd.f32 %v1022_v35, %v1939_v34  ;;  %v1804_v34 = vld [vmem:[%s2206_s1 + $0x78] sm:$0xff]   ;;  %v1562_v35 = vld [vmem:[%s2207_s2 + $0xc] ss:$0 sm:$0xff] }
 0x871   :  { %1745 = vmatpush3.bf16.msra.mxu0 %v1804_v34 }
 0x872   :  { %v1030_v39 = vsel %vm45_vm0, %v1024_v38, 0.0  ;;  %1746 = vmatprep.subr.bf16.mxu0 %v1875_v16 }
 0x873   :  { %1031 = vadd.xlane.f32.xlu1 %v1030_v39 }
 0x875   :  { %1747 = vmatpush3.bf16.msra.mxu0 %v1805_v49 }
 0x876   :  { %1764 = vmatprep.subr.bf16.mxu0 %v1875_v16 }
 0x8f8   :  { %v1029_v40 = vpop.xlane.xlu0 %1028 }
 0x8f9   :  { %v1033_v41 = vmul.f32 0.03125, %v1029_v40 }
 0x8fb   :  { %v1035_v42 = vsub.f32 %v1023_v31, %v1033_v41 }
 0x8fc   :  { %v1032_v43 = vpop.xlane.xlu1 %1031 }
 0x8fd   :  { %v1034_v44 = vmul.f32 0.03125, %v1032_v43  ;;  %v1037_v45 = vmul.f32 %v1035_v42, %v1035_v42 }
 0x8ff   :  { %v1036_v46 = vsub.f32 %v1024_v38, %v1034_v44  ;;  %v1039_v47 = vsel %vm45_vm0, %v1037_v45, 0.0 }
 0x900   :  { %1040 = vadd.xlane.f32.xlu0 %v1039_v47 }
 0x901   :  { %v1038_v33 = vmul.f32 %v1036_v46, %v1036_v46 }
 0x903   :  { %v1042_v48 = vsel %vm45_vm0, %v1038_v33, 0.0 }
 0x904   :  { %1043 = vadd.xlane.f32.xlu1 %v1042_v48 }
 0x989   :  { %v1041_v50 = vpop.xlane.xlu0 %1040 }
 0x98a   :  { %v1045_v51 = vmul.f32 0.03125, %v1041_v50 }
 0x98c   :  { %v1047_v52 = vadd.f32 1e-12, %v1045_v51 }
 0x98d   :  { %v1044_v53 = vpop.xlane.xlu1 %1043 }
 0x98e   :  { %1835 = vrsqrt.f32 %v1047_v52  ;;  %v1046_v54 = vmul.f32 0.03125, %v1044_v53 }
 0x990   :  { %v1048_v55 = vadd.f32 1e-12, %v1046_v54 }
 0x992   :  { %1837 = vrsqrt.f32 %v1048_v55  ;;  %v42_v55 = vld [vmem:[%s2205_s0 + $0x12] sm:$0x3] }
 0x99b   :  { %v1836_v56 = vpop.eup %1835 }
 0x99c   :  { %v1051_v57 = vmul.f32 %v1836_v56, %v1035_v42  ;;  %v1570_v56 = vld [vmem:[%s2207_s2 + $0xf] ss:$0 sm:$0xff] }
 0x99e   :  { %v1057_v61 = vmul.f32 %v1556_v58, %v1051_v57  ;;  %v1279_v57 = vmul.f32 %v1570_v56, %v42_v55 }
 0x99f   :  { %v1838_v15 = vpop.eup %1837 }
 0x9a0   :  { %v1052_v59 = vmul.f32 %v1838_v15, %v1036_v46  ;;  %v1063_v22 = vadd.f32 %v1557_v62, %v1057_v61  ;;  %v1571_v15 = vld [vmem:[%s2207_s2 + $0x10] ss:$0 sm:$0xff] }
 0x9a2   :  { %v1058_v1 = vmul.f32 %v1556_v58, %v1052_v59  ;;  %v1810_v58 = vld [vmem:[%s2206_s1 + $0xb0] sm:$0xff]   ;;  %v1285_v59 = vadd.f32 %v1571_v15, %v1279_v57 }
 0x9a4   :  { %v1064_v2 = vadd.f32 %v1557_v62, %v1058_v1  ;;  %v1292_v61 = vpack.c.bf16 %v1285_v59, %v1285_v59  ;;  %v1811_v62 = vld [vmem:[%s2206_s1 + $0xa8] sm:$0xff]   ;;  %v1812_v1 = vld [vmem:[%s2206_s1 + $0xa0] sm:$0xff]  }
 0x9a6   :  { %v1065_v3 = vpack.c.bf16 %v1064_v2, %v1063_v22 }
 0x9a8   :  { %1749 = vmatmul.mubr.msk.bf16.vlgmr.msra.gmra.mxu0 %vm45_vm0, %v1065_v3 }
 0x9a9   :  { %1766 = vmatprep.mubr.msk.bf16.mxu0 %vm1876_vm1, %v1875_v16  ;;  %1765 = vmatpush3.bf16.msra.mxu0 %v1810_v58 }
 0x9aa   :  { %1770 = vmatprep.subr.bf16.mxu0 %v1875_v16 }
 0x9b0   :  { %1767 = vmatmul.mubr.msk.bf16.vlgmr.msra.gmra.mxu0 %vm279_vm2, %v1292_v61 }
 0x9b1   :  { %1774 = vmatprep.mubr.msk.bf16.mxu0 %vm1876_vm1, %v1875_v16  ;;  %1771 = vmatpush3.bf16.msra.mxu0 %v1811_v62 }
 0x9b2   :  { %1772 = vmatprep.subr.bf16.mxu0 %v1875_v16 }
 0x9b5   :  { %1773 = vmatpush3.bf16.msra.mxu0 %v1812_v1 }
 0xa68   :  { %v1124_v8 = vpop.f32.mrf.mxu0 }
 0xa69   :  { %v1125_v9 = vadd.f32 %v1558_v7, %v1124_v8 }
 0xa6a   :  { %v1750_v10 = vpop.f32.mrf.mxu0 }
 0xa6b   :  { %v1131_v11 = vmul.f32 %v1125_v9, %v1125_v9 }
 0xa6c   :  { %v1127_v12 = vpop.f32.mrf.mxu0 }
 0xa6d   :  { %v1133_v13 = vmul.f32 %v1131_v11, %v1125_v9  ;;  %v1128_v14 = vadd.f32 %v1558_v7, %v1127_v12  ;;  %v1568_v7 = vld [vmem:[%s2207_s2 + $0xd] ss:$0 sm:$0xff]  ;;  %v1569_v11 = vld [vmem:[%s2207_s2 + $0xe] ss:$0 sm:$0xff] }
 0xa6e   :  { %v1751_v17 = vpop.f32.mrf.mxu0 }
 0xa6f   :  { %v1135_v18 = vmul.f32 0.044715, %v1133_v13  ;;  %v1132_v19 = vmul.f32 %v1128_v14, %v1128_v14 }
 0xa71   :  { %v1137_v60 = vadd.f32 %v1135_v18, %v1125_v9  ;;  %v1134_v63 = vmul.f32 %v1132_v19, %v1128_v14 }
 0xa73   :  { %v1139_v0 = vmul.f32 0.7978846, %v1137_v60  ;;  %v1136_v20 = vmul.f32 0.044715, %v1134_v63 }
 0xa75   :  { %1839 = vtanh.f32 %v1139_v0  ;;  %v1138_v21 = vadd.f32 %v1136_v20, %v1128_v14 }
 0xa77   :  { %v1140_v23 = vmul.f32 0.7978846, %v1138_v21 }
 0xa79   :  { %1841 = vtanh.f32 %v1140_v23  ;;  %v1338_v23 = vpop.f32.mrf.mxu0 }
 0xa82   :  { %v1840_v24 = vpop.eup %1839 }
 0xa83   :  { %v1143_v25 = vadd.f32 1.0, %v1840_v24  ;;  %v1768_v24 = vpop.f32.mrf.mxu0 }
 0xa85   :  { %v1145_v27 = vmul.f32 0.5, %v1143_v25  ;;  %v1341_v25 = vpop.f32.mrf.mxu0 }
 0xa86   :  { %v1842_v26 = vpop.eup %1841 }
 0xa87   :  { %v1144_v28 = vadd.f32 1.0, %v1842_v26  ;;  %v1147_v30 = vmul.f32 %v1145_v27, %v1125_v9  ;;  %v1769_v26 = vpop.f32.mrf.mxu0  ;;  %v1813_v27 = vld [vmem:[%s2206_s1 + $0xc0] sm:$0xff]  }
 0xa89   :  { %v1146_v29 = vmul.f32 0.5, %v1144_v28  ;;  %v1814_v28 = vld [vmem:[%s2206_s1 + $0xb8] sm:$0xff]  }
 0xa8b   :  { %v1148_v31 = vmul.f32 %v1146_v29, %v1128_v14 }
 0xa8d   :  { %v1149_v32 = vpack.c.bf16 %v1148_v31, %v1147_v30  ;;  %v1577_v30 = vld [vmem:[%s2207_s2 + $0x11] ss:$0 sm:$0xff] }
 0xa8f   :  { %1761 = vmatmul.mubr.msk.bf16.vlgmr.msra.gmra.mxu1 %vm1187_vm5, %v1149_v32 }
 0xa90   :  { %1782 = vmatprep.mubr.msk.bf16.mxu1 %vm1876_vm1, %v1875_v16  ;;  %1779 = vmatpush3.bf16.msra.mxu1 %v1813_v27 }
 0xa91   :  { %1780 = vmatprep.subr.bf16.mxu1 %v1875_v16 }
 0xa94   :  { %1781 = vmatpush3.bf16.msra.mxu1 %v1814_v28 }
 0xb4f   :  { %v1225_v37 = vpop.f32.mrf.mxu1 }
 0xb50   :  { %v1226_v38 = vadd.f32 %v1562_v35, %v1225_v37 }
 0xb51   :  { %v1762_v39 = vpop.f32.mrf.mxu1 }
 0xb52   :  { %v1232_v40 = vadd.f32 %v1226_v38, %v1063_v22 }
 0xb53   :  { %v1228_v41 = vpop.f32.mrf.mxu1 }
 0xb54   :  { %v1229_v42 = vadd.f32 %v1562_v35, %v1228_v41  ;;  %v1236_v43 = vsel %vm45_vm0, %v1232_v40, 0.0 }
 0xb55   :  { %1237 = vadd.xlane.f32.xlu1 %v1236_v43  ;;  %v1763_v44 = vpop.f32.mrf.mxu1 }
 0xb56   :  { %v1233_v45 = vadd.f32 %v1229_v42, %v1064_v2 }
 0xb58   :  { %v1239_v46 = vsel %vm45_vm0, %v1233_v45, 0.0 }
 0xb59   :  { %1240 = vadd.xlane.f32.xlu0 %v1239_v46 }
 0xbde   :  { %v1238_v47 = vpop.xlane.xlu1 %1237 }
 0xbdf   :  { %v1242_v33 = vmul.f32 0.03125, %v1238_v47 }
 0xbe1   :  { %v1244_v48 = vsub.f32 %v1232_v40, %v1242_v33  ;;  %v1578_v33 = vld [vmem:[%s2207_s2 + $0x12] ss:$0 sm:$0xff]  ;;  %s1878_s2 = smov [#allocation2]  }
 0xbe2   :  { %v1241_v34 = vpop.xlane.xlu0 %1240  ;;  %s1508_s25 = sshll.u32 %s1878_s2, 4  ;;  %s1509_s25 = int_to_ptr.vmem [resolvable:$true] %s1508_s25 }
 0xbe3   :  { %v1243_v49 = vmul.f32 0.03125, %v1241_v34  ;;  %v1246_v50 = vmul.f32 %v1244_v48, %v1244_v48  ;;  %s1853_s26 = scalar_lea.vmem %s1509_s25, 32  ;;  %p1858_p1 = scmp.lt.s32.totalorder %s1509_s25, %s1509_s25 }
 0xbe4   :  { %p1854_p0 = scmp.ne.s32.totalorder %s1509_s25, %s1853_s26  ;;  %p1859_p2 = scmp.lt.s32.totalorder %s1853_s26, %s1853_s26 }
 0xbe5   :  { %v1245_v51 = vsub.f32 %v1233_v45, %v1243_v49  ;;  %v1248_v52 = vsel %vm45_vm0, %v1246_v50, 0.0 }
 0xbe6   :  { %1249 = vadd.xlane.f32.xlu1 %v1248_v52  ;;  %p1860_p3 = por %p1859_p2, %p1858_p1 }
 0xbe7   :  { %v1247_v53 = vmul.f32 %v1245_v51, %v1245_v51 }
 0xbe8   :  { %p1861_p4 = pnand %p1860_p3, %p1854_p0 }
 0xbe9   :  { %v1251_v54 = vsel %vm45_vm0, %v1247_v53, 0.0 }
 0xbea   :  { %1252 = vadd.xlane.f32.xlu0 %v1251_v54 }
 0xc6f   :  { %v1250_v22 = vpop.xlane.xlu1 %1249 }
 0xc70   :  { %v1254_v2 = vmul.f32 0.03125, %v1250_v22 }
 0xc72   :  { %v1256_v3 = vadd.f32 1e-12, %v1254_v2 }
 0xc73   :  { %v1253_v4 = vpop.xlane.xlu0 %1252 }
 0xc74   :  { %1843 = vrsqrt.f32 %v1256_v3  ;;  %v1255_v5 = vmul.f32 0.03125, %v1253_v4 }
 0xc76   :  { %v1257_v6 = vadd.f32 1e-12, %v1255_v5 }
 0xc78   :  { %1845 = vrsqrt.f32 %v1257_v6 }
 0xc81   :  { %v1844_v36 = vpop.eup %1843 }
 0xc82   :  { %v1260_v8 = vmul.f32 %v1844_v36, %v1244_v48 }
 0xc84   :  { %v1266_v9 = vmul.f32 %v1568_v7, %v1260_v8 }
 0xc85   :  { %v1846_v10 = vpop.eup %1845 }
 0xc86   :  { %v1261_v12 = vmul.f32 %v1846_v10, %v1245_v51  ;;  %v1272_v14 = vadd.f32 %v1569_v11, %v1266_v9 }
 0xc88   :  { %v1267_v13 = vmul.f32 %v1568_v7, %v1261_v12  ;;  %v1286_v18 = vpack.c.bf16 %v1272_v14, %v1272_v14 }
 0xc8a   :  { %v1273_v17 = vadd.f32 %v1569_v11, %v1267_v13  ;;  %v1346_v63 = vunpack.c.l.b16 %v1286_v18 }
 0xc8c   :  { %v1287_v19 = vpack.c.bf16 %v1273_v17, %v1273_v17 }
 0xc8e   :  { %v1347_v60 = vunpack.c.l.b16 %v1287_v19 }
 0xc90   :  { %v1348_v0 = vrot.slane %v1347_v60, 7 }
 0xc92   :  { %v1350_v20 = vsel %vm1349_vm6, %v1348_v0, %v1346_v63 }
 0xc93   :  { %v1351_v21 = vpack.c.b16 %v1350_v20, %v1350_v20 }
 0xc95   :  { %1775 = vmatmul.mubr.msk.bf16.vlgmr.msra.gmra.mxu0 %vm45_vm0, %v1351_v21 }
 0xd55   :  { %v1401_v29 = vpop.f32.mrf.mxu0 }
 0xd56   :  { %v1402_v31 = vadd.f32 %v1401_v29, %v1338_v23 }
 0xd57   :  { %v1776_v32 = vpop.f32.mrf.mxu0 }
 0xd58   :  { %v1412_v35 = vadd.f32 %v1577_v30, %v1402_v31 }
 0xd59   :  { %v1404_v37 = vpop.f32.mrf.mxu0 }
 0xd5a   :  { %v1413_v38 = vmul.f32 %v1412_v35, %v1412_v35 }
 0xd5b   :  { %v1777_v39 = vpop.f32.mrf.mxu0 }
 0xd5c   :  { %v1414_v40 = vmul.f32 %v1413_v38, %v1412_v35 }
 0xd5e   :  { %v1415_v41 = vmul.f32 0.044715, %v1414_v40 }
 0xd60   :  { %v1416_v42 = vadd.f32 %v1415_v41, %v1412_v35 }
 0xd62   :  { %v1417_v16 = vmul.f32 0.7978846, %v1416_v42 }
 0xd64   :  { %1847 = vtanh.f32 %v1417_v16 }
 0xd71   :  { %v1848_v43 = vpop.eup %1847 }
 0xd72   :  { %v1419_v44 = vadd.f32 1.0, %v1848_v43 }
 0xd74   :  { %v1420_v45 = vmul.f32 0.5, %v1419_v44 }
 0xd76   :  { %v1421_v46 = vmul.f32 %v1420_v45, %v1412_v35 }
 0xd78   :  { %v1422_v47 = vpack.c.bf16 %v1421_v46, %v1421_v46 }
 0xd7a   :  { %1783 = vmatmul.mubr.msk.bf16.vlgmr.msra.gmra.mxu1 %vm45_vm0, %v1422_v47 }
 0xe3a   :  { %v1481_v48 = vpop.f32.mrf.mxu1 }
 0xe3b   :  { %v1482_v34 = vadd.f32 %v1578_v33, %v1481_v48 }
 0xe3c   :  { %v1784_v49 = vpop.f32.mrf.mxu1 }
 0xe3d   :  { %v1488_v50 = vsel %vm1487_vm7, %v1482_v34, -inf }
 0xe3e   :  { %1489 = vmax.xlane.f32.xlu0 %v1488_v50  ;;  %v1484_v51 = vpop.f32.mrf.mxu1 }
 0xe40   :  { %v1785_v52 = vpop.f32.mrf.mxu1 }
 0xec7   :  { %v1490_v53 = vpop.xlane.xlu0 %1489 }
 0xec8   :  { %v1491_v54 = vsub.f32 %v1482_v34, %v1490_v53 }
 0xeca   :  { %v1492_v55 = vmul.f32 1.442695, %v1491_v54 }
 0xecc   :  { %1849 = vpow2.f32 %v1492_v55 }
 0xed9   :  { %v1850_v56 = vpop.eup %1849 }
 0xeda   :  { %v1494_v57 = vsel %vm1487_vm7, %v1850_v56, 0.0 }
 0xedb   :  { %1495 = vadd.xlane.f32.xlu1 %v1494_v57 }
 0xf64   :  { %v1496_v58 = vpop.xlane.xlu1 %1495 }
 0xf65   :  { %1851 = vlog2.f32 %v1496_v58 }
 0xf72   :  { %v1852_v15 = vpop.eup %1851 }
 0xf73   :  { %v1498_v59 = vmul.f32 0.6931472, %v1852_v15 }
 0xf75   :  { %v1499_v61 = vadd.f32 %v1498_v59, %v1490_v53 }
 0xf77   :  { %v1500_v62 = vsub.f32 %v1482_v34, %v1499_v61 }
 0xf79   :  { %1501 = vst.msk [vmem:[#allocation2] sm:$0x3] %vm1487_vm7, %v1500_v62 }
 0xf7a   :  { %1864 = shalt.err (!%p1861_p4)
}
 0xf7b   :  { %1511 = dma.vmem_to_hbm [thread:$0]  %s1509_s25, 32, %s2208_s3, [#allocation3]  }
 0xf7c   :  { %1873 = dma.done.wait [#allocation3], 32  }
 0xf7d   :  { %1874 = vsyncadd [#allocation3], 4294967264 }
 0xf7e   :  { %1515 = vsyncpa [#allocation3], 1 }

</bundles_post_ra>
